<compile_context>
chip_gen: v7x
topology: tpu7x:2x2x1
jax: 0.10.0
libtpu: 0.0.40
codegen_flags: <defaults>
</compile_context>

<pallas_src>
import jax
import jax.numpy as jnp
from jax.experimental import pallas as pl
from jax.experimental.pallas import tpu as pltpu


def embedder_kernel(ids_ref, mask_ref, table_ref, out_ref, acc_ref):
    """grid = (D_tiles, V_tiles); axis 1 (vocab) is the reduction axis.

    ids_ref   : (B, S)   int32   -- resident (same block every step)
    mask_ref  : (B, S)   float32 -- resident
    table_ref : (TV, TD)         -- streamed vocab x feature tile
    out_ref   : (B, TD)  float32
    acc_ref   : (B, TD)  float32 VMEM scratch accumulator
    """
    kv = pl.program_id(1)
    n_kv = pl.num_programs(1)

    @pl.when(kv == 0)
    def _():
        acc_ref[...] = jnp.zeros_like(acc_ref)

    ids = ids_ref[...]        # (B, S) int32
    mask = mask_ref[...]      # (B, S) float32 (already cast in the wrapper)
    table = table_ref[...]    # (TV, TD)

    tv = table.shape[0]
    base = kv * tv

    # Weighted per-tile count matrix: C[b, v] = sum_s mask[b, s] * (ids[b, s] == base + v).
    # Built per V-tile only (shape (B, S, TV)), iota created once per grid step.
    vocab = base + jax.lax.broadcasted_iota(jnp.int32, (1, 1, tv), 2)
    hits = (ids[:, :, None] == vocab).astype(jnp.float32)          # (B, S, TV)
    counts = jnp.sum(hits * mask[:, :, None], axis=1)              # (B, TV)

    # MXU matmul on the collapsed (B, TV) counts; counts are exact small integers/mask sums,
    # so casting them to the table dtype (e.g. bf16 tables on v6e/v7x) is lossless.
    acc_ref[...] += jnp.dot(
        counts.astype(table.dtype), table, preferred_element_type=jnp.float32
    )

    @pl.when(kv == n_kv - 1)
    def _():
        denom = jnp.maximum(jnp.sum(mask, axis=1, keepdims=True), 1.0)   # (B, 1)
        out_ref[...] = (acc_ref[...] / denom).astype(out_ref.dtype)


def _round_up(x: int, m: int) -> int:
    return ((x + m - 1) // m) * m


def embed(batch: dict, table: jax.Array, *, tile_v: int = 256, tile_d: int = 256) -> jax.Array:
    """Masked mean-pooled embedding lookup: (B, S) ids + mask, (V, D) table -> (B, D)."""
    ids = batch["input_ids"].astype(jnp.int32)           # (B, S)
    mask = batch["attention_mask"].astype(jnp.float32)   # (B, S)
    B, S = ids.shape
    V, D = table.shape

    # (8, 128)-aligned, lane-dense padded shapes.
    Bp = _round_up(B, 8)
    Sp = _round_up(S, 128)
    TV = min(tile_v, _round_up(V, 8))
    Vp = _round_up(V, TV)
    TD = min(tile_d, _round_up(D, 128))
    Dp = _round_up(_round_up(D, 128), TD)

    # Padded ids are 0 but their mask is 0, so they contribute nothing; padded vocab rows
    # and feature columns of the table are zero and are sliced off at the end.
    ids_p = jnp.zeros((Bp, Sp), jnp.int32).at[:B, :S].set(ids)
    mask_p = jnp.zeros((Bp, Sp), jnp.float32).at[:B, :S].set(mask)
    table_p = jnp.zeros((Vp, Dp), table.dtype).at[:V, :D].set(table)

    grid = (Dp // TD, Vp // TV)   # (independent feature tiles, vocab reduction)

    out_p = pl.pallas_call(
        embedder_kernel,
        out_shape=jax.ShapeDtypeStruct((Bp, Dp), jnp.float32),
        grid=grid,
        in_specs=[
            pl.BlockSpec((Bp, Sp), lambda j, kv: (0, 0)),    # ids (resident)
            pl.BlockSpec((Bp, Sp), lambda j, kv: (0, 0)),    # mask (resident)
            pl.BlockSpec((TV, TD), lambda j, kv: (kv, j)),   # streamed table tile
        ],
        out_specs=pl.BlockSpec((Bp, TD), lambda j, kv: (0, j)),
        scratch_shapes=[pltpu.VMEM((Bp, TD), jnp.float32)],
        compiler_params=pltpu.CompilerParams(
            dimension_semantics=("parallel", "arbitrary"),
            vmem_limit_bytes=32 * 1024 * 1024,
        ),
    )(ids_p, mask_p, table_p)

    return out_p[:B, :D]


def embed_ref(batch: dict, table: jax.Array) -> jax.Array:
    """Pure-JAX reference for correctness check."""
    ids = batch["input_ids"].astype(jnp.int32)
    mask = batch["attention_mask"].astype(jnp.float32)
    emb = jnp.take(table, ids, axis=0)                        # (B, S, D)
    summed = jnp.sum(emb * mask[:, :, None], axis=1)
    denom = jnp.maximum(jnp.sum(mask, axis=1, keepdims=True), 1.0)
    return summed / denom


if __name__ == "__main__":
    B, S, V, D = 2, 8, 16, 32

    key = jax.random.PRNGKey(0)
    k_table, k_ids, k_mask = jax.random.split(key, 3)

    # Deterministic synthetic "parameter" (embedding table) and inputs.
    table = jax.random.normal(k_table, (V, D), dtype=jnp.float32)
    input_ids = jax.random.randint(k_ids, (B, S), minval=0, maxval=V, dtype=jnp.int32)
    attention_mask = (jax.random.uniform(k_mask, (B, S)) > 0.25).astype(jnp.float32)

    batch = {"input_ids": input_ids, "attention_mask": attention_mask}

    out = embed(batch, table)
    out = jax.block_until_ready(out)

    ref = embed_ref(batch, table)
    assert out.shape == (B, D)
    assert jnp.allclose(out, ref, atol=1e-5, rtol=1e-5)

    print("KERNEL_OK")
</pallas_src>

<mosaic_0001>
module attributes {stable_mosaic.version = 11 : i64} {
  func.func @embedder_kernel(%arg0: i32, %arg1: i32, %arg2: memref<8x128xi32, #tpu.memory_space<vmem>>, %arg3: memref<8x128xf32, #tpu.memory_space<vmem>>, %arg4: memref<16x128xf32, #tpu.memory_space<vmem>>, %arg5: memref<8x128xf32, #tpu.memory_space<vmem>>, %arg6: memref<8x128xf32, #tpu.memory_space<vmem>>) attributes {dimension_semantics = [#tpu.dimension_semantics<parallel>, #tpu.dimension_semantics<arbitrary>], iteration_bounds = array<i64: 1, 1>, scalar_prefetch = 0 : i64, scratch_operands = 1 : i64, tpu.core_type = #tpu.core_type<tc>, window_params = [{pipeline_mode = #tpu.pipeline_mode<synchronous>, transform_indices = @transform_0, window_bounds = array<i64: 8, 128>}, {pipeline_mode = #tpu.pipeline_mode<synchronous>, transform_indices = @transform_1, window_bounds = array<i64: 8, 128>}, {transform_indices = @transform_2, window_bounds = array<i64: 16, 128>}, {transform_indices = @transform_3, window_bounds = array<i64: 8, 128>}]} {
    %c0_i32 = arith.constant 0 : i32
    %0 = arith.cmpi eq, %arg1, %c0_i32 : i32
    %1 = arith.extui %0 : i1 to i32
    %c0_i32_0 = arith.constant 0 : i32
    %2 = arith.cmpi ne, %1, %c0_i32_0 : i32
    scf.if %2 {
      %cst_13 = arith.constant 0.000000e+00 : f32
      %27 = vector.broadcast %cst_13 : f32 to vector<8x128xf32>
      %c0_14 = arith.constant 0 : index
      %c0_15 = arith.constant 0 : index
      %28 = vector.load %arg6[%c0_14, %c0_15] : memref<8x128xf32, #tpu.memory_space<vmem>>, vector<8x128xf32>
      tpu.vector_store %arg6[%c0_14, %c0_15], %27 {strides = array<i32>} : memref<8x128xf32, #tpu.memory_space<vmem>>, vector<8x128xf32>,
    } else {
    }
    %c0 = arith.constant 0 : index
    %c0_1 = arith.constant 0 : index
    %3 = vector.load %arg2[%c0, %c0_1] : memref<8x128xi32, #tpu.memory_space<vmem>>, vector<8x128xi32>
    %c0_2 = arith.constant 0 : index
    %c0_3 = arith.constant 0 : index
    %4 = vector.load %arg3[%c0_2, %c0_3] : memref<8x128xf32, #tpu.memory_space<vmem>>, vector<8x128xf32>
    %c0_4 = arith.constant 0 : index
    %c0_5 = arith.constant 0 : index
    %5 = vector.load %arg4[%c0_4, %c0_5] : memref<16x128xf32, #tpu.memory_space<vmem>>, vector<16x128xf32>
    %c16_i32 = arith.constant 16 : i32
    %6 = arith.muli %arg1, %c16_i32 : i32
    %7 = tpu.iota {dimensions = array<i32: 2>} : vector<1x1x16xi32>
    %8 = vector.broadcast %6 : i32 to vector<1x1x16xi32>
    %9 = arith.addi %8, %7 : vector<1x1x16xi32>
    %10 = vector.shape_cast %3 : vector<8x128xi32> to vector<8x128x1xi32>
    %11 = vector.broadcast %10 : vector<8x128x1xi32> to vector<8x128x16xi32>
    %12 = vector.broadcast %9 : vector<1x1x16xi32> to vector<8x128x16xi32>
    %13 = arith.cmpi eq, %11, %12 : vector<8x128x16xi32>
    %14 = arith.extui %13 : vector<8x128x16xi1> to vector<8x128x16xi32>
    %15 = arith.sitofp %14 : vector<8x128x16xi32> to vector<8x128x16xf32>
    %16 = vector.shape_cast %4 : vector<8x128xf32> to vector<8x128x1xf32>
    %17 = vector.broadcast %16 : vector<8x128x1xf32> to vector<8x128x16xf32>
    %18 = arith.mulf %15, %17 : vector<8x128x16xf32>
    %cst = arith.constant dense<0.000000e+00> : vector<8x16xf32>
    %19 = vector.multi_reduction <add>, %18, %cst [1] : vector<8x128x16xf32> to vector<8x16xf32>
    %c0_6 = arith.constant 0 : index
    %c0_7 = arith.constant 0 : index
    %20 = vector.load %arg6[%c0_6, %c0_7] : memref<8x128xf32, #tpu.memory_space<vmem>>, vector<8x128xf32>
    %cst_8 = arith.constant dense<0.000000e+00> : vector<8x128xf32>
    %21 = tpu.matmul %19, %5, %cst_8 {dimension_numbers = #tpu.dot_dimension_numbers<[1], [0], [0], [1], [0, 0, 1, 1], [], []>} : vector<8x16xf32>, vector<16x128xf32>, vector<8x128xf32> -> vector<8x128xf32>
    %22 = arith.addf %20, %21 : vector<8x128xf32>
    %c0_9 = arith.constant 0 : index
    %c0_10 = arith.constant 0 : index
    %23 = vector.load %arg6[%c0_9, %c0_10] : memref<8x128xf32, #tpu.memory_space<vmem>>, vector<8x128xf32>
    tpu.vector_store %arg6[%c0_9, %c0_10], %22 {strides = array<i32>} : memref<8x128xf32, #tpu.memory_space<vmem>>, vector<8x128xf32>,
    %c0_i32_11 = arith.constant 0 : i32
    %24 = arith.cmpi eq, %arg1, %c0_i32_11 : i32
    %25 = arith.extui %24 : i1 to i32
    %c0_i32_12 = arith.constant 0 : i32
    %26 = arith.cmpi ne, %25, %c0_i32_12 : i32
    scf.if %26 {
      %cst_13 = arith.constant dense<0.000000e+00> : vector<8xf32>
      %27 = vector.multi_reduction <add>, %4, %cst_13 [1] : vector<8x128xf32> to vector<8xf32>
      %28 = vector.shape_cast %27 : vector<8xf32> to vector<8x1xf32>
      %cst_14 = arith.constant 1.000000e+00 : f32
      %29 = vector.broadcast %cst_14 : f32 to vector<8x1xf32>
      %30 = arith.maximumf %28, %29 : vector<8x1xf32>
      %c0_15 = arith.constant 0 : index
      %c0_16 = arith.constant 0 : index
      %31 = vector.load %arg6[%c0_15, %c0_16] : memref<8x128xf32, #tpu.memory_space<vmem>>, vector<8x128xf32>
      %32 = vector.broadcast %30 : vector<8x1xf32> to vector<8x128xf32>
      %33 = arith.divf %31, %32 : vector<8x128xf32>
      %c0_17 = arith.constant 0 : index
      %c0_18 = arith.constant 0 : index
      %34 = vector.load %arg5[%c0_17, %c0_18] : memref<8x128xf32, #tpu.memory_space<vmem>>, vector<8x128xf32>
      tpu.vector_store %arg5[%c0_17, %c0_18], %33 {strides = array<i32>} : memref<8x128xf32, #tpu.memory_space<vmem>>, vector<8x128xf32>,
    } else {
    }
    return
  }
  func.func @transform_0(%arg0: i32, %arg1: i32) -> (i32, i32) {
    %c0_i32 = arith.constant 0 : i32
    %c0_i32_0 = arith.constant 0 : i32
    %c0_i32_1 = arith.constant 0 : i32
    return %c0_i32, %c0_i32_0 : i32, i32
  }
  func.func @transform_1(%arg0: i32, %arg1: i32) -> (i32, i32) {
    %c0_i32 = arith.constant 0 : i32
    %c0_i32_0 = arith.constant 0 : i32
    %c0_i32_1 = arith.constant 0 : i32
    return %c0_i32, %c0_i32_0 : i32, i32
  }
  func.func @transform_2(%arg0: i32, %arg1: i32) -> (i32, i32) {
    %c0_i32 = arith.constant 0 : i32
    return %arg1, %arg0 : i32, i32
  }
  func.func @transform_3(%arg0: i32, %arg1: i32) -> (i32, i32) {
    %c0_i32 = arith.constant 0 : i32
    %c0_i32_0 = arith.constant 0 : i32
    return %c0_i32, %arg0 : i32, i32
  }
}

</mosaic_0001>

<bundles_post_ra>
// kernel: tpu_custom_call.1
= control target key start
LH: loop header
LB: loop body
LE: loop exit
PB: predicated region body
PF: predicated region fallthrough
CT: control target
= control target key end

     0   :  { %8 = vsyncpa [#allocation4], 0  ;;  %s3940_s0 = inlined_call_operand.hbm [shape: s32[8,128], index: 0, kind: input, shape index: {}]   ;;  %s3941_s1 = inlined_call_operand.hbm [shape: f32[8,128], index: 1, kind: input, shape index: {}]   ;;  %s3942_s2 = inlined_call_operand.hbm [shape: f32[16,128], index: 2, kind: input, shape index: {}]   ;;  %s3943_s3 = inlined_call_operand.hbm [shape: f32[8,128], index: 3, kind: output, shape index: {}]  }
   0x1   :  { %9 = vsyncpa [#allocation7], 0 }
   0x2   :  { %10 = vsyncpa [#allocation5], 0  ;;  %s2318_s12 = smov [#allocation6]   ;;  %s2319_s14 = smov [#allocation3]  }
   0x3   :  { %s27_s13 = sshll.u32 %s2318_s12, 4  ;;  %s17_s15 = sshll.u32 %s2319_s14, 4  ;;  %s28_s13 = int_to_ptr.vmem [resolvable:$true] %s27_s13  ;;  %s18_s15 = int_to_ptr.vmem [resolvable:$true] %s17_s15 }
   0x4   :  { %s2224_s18 = scalar_lea.hbm %s3941_s1, 128 }
   0x5   :  { %p2225_p0 = scmp.ne.s32.totalorder %s3941_s1, %s2224_s18  ;;  %p2228_p1 = scmp.lt.u32.totalorder %s2224_s18, %s3941_s1 }
   0x7   :  { %p2230_p2 = pnand %p2228_p1, %p2225_p0 }
   0x9   :  { %2233 = shalt.err (!%p2230_p2)
}
   0xa   :  { %s2234_s23 = scalar_lea.vmem %s28_s13, 128  ;;  %p2239_p4 = scmp.lt.s32.totalorder %s28_s13, %s28_s13 }
   0xb   :  { %p2235_p3 = scmp.ne.s32.totalorder %s28_s13, %s2234_s23  ;;  %p2240_p5 = scmp.lt.s32.totalorder %s2234_s23, %s2234_s23 }
   0xd   :  { %p2241_p6 = por %p2240_p5, %p2239_p4 }
   0xf   :  { %p2242_p7 = pnand %p2241_p6, %p2235_p3 }
  0x11   :  { %2245 = shalt.err (!%p2242_p7)
}
  0x12   :  { %30 = dma.hbm_to_vmem [thread:$0]  %s3941_s1, 128, %s28_s13, [#allocation7]  }
  0x13   :  { %s2246_s28 = scalar_lea.hbm %s3940_s0, 128 }
  0x14   :  { %p2247_p8 = scmp.ne.s32.totalorder %s3940_s0, %s2246_s28  ;;  %p2250_p9 = scmp.lt.u32.totalorder %s2246_s28, %s3940_s0 }
  0x16   :  { %p2252_p10 = pnand %p2250_p9, %p2247_p8 }
  0x18   :  { %2255 = shalt.err (!%p2252_p10)
}
  0x19   :  { %s2256_s6 = scalar_lea.vmem %s18_s15, 128  ;;  %p2261_p12 = scmp.lt.s32.totalorder %s18_s15, %s18_s15 }
  0x1a   :  { %p2257_p11 = scmp.ne.s32.totalorder %s18_s15, %s2256_s6  ;;  %p2262_p13 = scmp.lt.s32.totalorder %s2256_s6, %s2256_s6 }
  0x1c   :  { %p2263_p0 = por %p2262_p13, %p2261_p12 }
  0x1e   :  { %p2264_p1 = pnand %p2263_p0, %p2257_p11 }
  0x20   :  { %2267 = shalt.err (!%p2264_p1)
}
  0x21   :  { %20 = dma.hbm_to_vmem [thread:$0]  %s3940_s0, 128, %s18_s15, [#allocation4]  }
  0x22   :  { %s2320_s8 = smov [#allocation8]   ;;  %s2268_s12 = scalar_lea.hbm %s3942_s2, 256 }
  0x23   :  { %s36_s9 = sshll.u32 %s2320_s8, 4  ;;  %p2269_p2 = scmp.ne.s32.totalorder %s3942_s2, %s2268_s12  ;;  %s37_s9 = int_to_ptr.vmem [resolvable:$true] %s36_s9 }
  0x24   :  { %p2272_p3 = scmp.lt.u32.totalorder %s2268_s12, %s3942_s2 }
  0x26   :  { %p2274_p4 = pnand %p2272_p3, %p2269_p2 }
  0x28   :  { %2277 = shalt.err (!%p2274_p4)
}
  0x29   :  { %s2278_s18 = scalar_lea.vmem %s37_s9, 256  ;;  %p2283_p6 = scmp.lt.s32.totalorder %s37_s9, %s37_s9 }
  0x2a   :  { %p2279_p5 = scmp.ne.s32.totalorder %s37_s9, %s2278_s18  ;;  %p2284_p7 = scmp.lt.s32.totalorder %s2278_s18, %s2278_s18 }
  0x2c   :  { %p2285_p8 = por %p2284_p7, %p2283_p6 }
  0x2e   :  { %p2286_p9 = pnand %p2285_p8, %p2279_p5 }
  0x30   :  { %2289 = shalt.err (!%p2286_p9)
}
  0x31   :  { %s2321_s0 = smov 128   ;;  %s2322_s15 = smov 8  }
  0x32   :  { %42 = dma.hbm_to_vmem [thread:$0]  %s3942_s2, 256, %s37_s9, [#allocation7], %s2321_s0, %s2321_s0, %s2322_s15  }
  0x33   :  { %2312 = dma.done.wait [#allocation4], 128  }
  0x34   :  { %2313 = vsyncadd [#allocation4], 4294967168 }
  0x35   :  { %2314 = dma.done.wait [#allocation7], 384  }
  0x36   :  { %2315 = vsyncadd [#allocation7], 4294966912  ;;  %v3944_v0 = vlaneseq  ;;  %v57_v9 = vld [vmem:[#allocation3] sm:$0xff]  ;;  %v2555_v61 = vld [vmem:[#allocation6] sm:$0xff]  ;;  %s2326_s2 = smov [#allocation9]  }
  0x37   :  { %s2060_s21 = sshll.u32 %s2326_s2, 4  ;;  %s2061_s21 = int_to_ptr.vmem [resolvable:$true] %s2060_s21 }
  0x38   :  { %v2384_v1 = vshrl.u32 %v3944_v0, 7  ;;  %s2290_s22 = scalar_lea.vmem %s2061_s21, 128  ;;  %p2295_p11 = scmp.lt.s32.totalorder %s2061_s21, %s2061_s21 }
  0x39   :  { %p2291_p10 = scmp.ne.s32.totalorder %s2061_s21, %s2290_s22  ;;  %p2296_p12 = scmp.lt.s32.totalorder %s2290_s22, %s2290_s22 }
  0x3a   :  { %v68_v2 = vsub.s32 0, %v2384_v1  ;;  %v202_v3 = vsub.s32 2, %v2384_v1  ;;  %v269_v4 = vsub.s32 3, %v2384_v1  ;;  %v336_v5 = vsub.s32 4, %v2384_v1 }
  0x3b   :  { %v3947_v6 = vsub.s32 5, %v2384_v1  ;;  %v3946_v7 = vsub.s32 6, %v2384_v1  ;;  %v3945_v8 = vsub.s32 7, %v2384_v1  ;;  %v135_v17 = vsub.s32 1, %v2384_v1  ;;  %p2297_p13 = por %p2296_p12, %p2295_p11 }
  0x3c   :  { %v69_v10 = vrot.slane %v57_v9, %v68_v2  ;;  %v203_v11 = vrot.slane %v57_v9, %v202_v3  ;;  %v2399_v12 = vrot.slane %v57_v9, %v269_v4  ;;  %v2403_v13 = vrot.slane %v57_v9, %v336_v5 }
  0x3d   :  { %v2407_v14 = vrot.slane %v57_v9, %v3947_v6  ;;  %v2411_v15 = vrot.slane %v57_v9, %v3946_v7  ;;  %v2415_v16 = vrot.slane %v57_v9, %v3945_v8  ;;  %v136_v18 = vrot.slane %v57_v9, %v135_v17  ;;  %p2298_p0 = pnand %p2297_p13, %p2291_p10 }
  0x3e   :  { %79 = vbcast.lane.b32.xlu1 %v69_v10, 272  ;;  %71 = vbcast.lane.b32.xlu0 %v69_v10, 256  ;;  %v2565_v9 = vrot.slane %v2555_v61, %v68_v2 }
  0x3f   :  { %3965 = vst [vmem:[#allocation13_spill] sm:$0xff] %v2415_v16 }
  0x40   :  { %3984 = vst [vmem:[#allocation32_spill] sm:$0xff] %v2565_v9 }
  0x42   :  { %83 = vbcast.lane.b32.xlu1 %v69_v10, 280  ;;  %75 = vbcast.lane.b32.xlu0 %v69_v10, 264 }
  0x46   :  { %91 = vbcast.lane.b32.xlu1 %v69_v10, 296  ;;  %87 = vbcast.lane.b32.xlu0 %v69_v10, 288 }
  0x4a   :  { %99 = vbcast.lane.b32.xlu1 %v69_v10, 312  ;;  %95 = vbcast.lane.b32.xlu0 %v69_v10, 304 }
  0x4e   :  { %107 = vbcast.lane.b32.xlu1 %v69_v10, 328  ;;  %103 = vbcast.lane.b32.xlu0 %v69_v10, 320 }
  0x52   :  { %115 = vbcast.lane.b32.xlu1 %v69_v10, 344  ;;  %111 = vbcast.lane.b32.xlu0 %v69_v10, 336 }
  0x56   :  { %123 = vbcast.lane.b32.xlu1 %v69_v10, 360  ;;  %119 = vbcast.lane.b32.xlu0 %v69_v10, 352 }
  0x5a   :  { %131 = vbcast.lane.b32.xlu1 %v69_v10, 376  ;;  %127 = vbcast.lane.b32.xlu0 %v69_v10, 368 }
  0x5e   :  { %142 = vbcast.lane.b32.xlu1 %v136_v18, 264  ;;  %138 = vbcast.lane.b32.xlu0 %v136_v18, 256 }
  0x62   :  { %150 = vbcast.lane.b32.xlu1 %v136_v18, 280  ;;  %146 = vbcast.lane.b32.xlu0 %v136_v18, 272 }
  0x66   :  { %158 = vbcast.lane.b32.xlu1 %v136_v18, 296  ;;  %154 = vbcast.lane.b32.xlu0 %v136_v18, 288 }
  0x6a   :  { %166 = vbcast.lane.b32.xlu1 %v136_v18, 312  ;;  %162 = vbcast.lane.b32.xlu0 %v136_v18, 304 }
  0x6e   :  { %174 = vbcast.lane.b32.xlu1 %v136_v18, 328  ;;  %170 = vbcast.lane.b32.xlu0 %v136_v18, 320 }
  0x72   :  { %182 = vbcast.lane.b32.xlu1 %v136_v18, 344  ;;  %178 = vbcast.lane.b32.xlu0 %v136_v18, 336 }
  0x76   :  { %190 = vbcast.lane.b32.xlu1 %v136_v18, 360  ;;  %186 = vbcast.lane.b32.xlu0 %v136_v18, 352 }
  0x7a   :  { %198 = vbcast.lane.b32.xlu1 %v136_v18, 376  ;;  %194 = vbcast.lane.b32.xlu0 %v136_v18, 368 }
  0x7e   :  { %209 = vbcast.lane.b32.xlu1 %v203_v11, 264  ;;  %205 = vbcast.lane.b32.xlu0 %v203_v11, 256 }
  0x82   :  { %217 = vbcast.lane.b32.xlu1 %v203_v11, 280  ;;  %213 = vbcast.lane.b32.xlu0 %v203_v11, 272 }
  0x86   :  { %225 = vbcast.lane.b32.xlu1 %v203_v11, 296  ;;  %221 = vbcast.lane.b32.xlu0 %v203_v11, 288 }
  0x8a   :  { %233 = vbcast.lane.b32.xlu1 %v203_v11, 312  ;;  %229 = vbcast.lane.b32.xlu0 %v203_v11, 304 }
  0x8e   :  { %241 = vbcast.lane.b32.xlu1 %v203_v11, 328  ;;  %237 = vbcast.lane.b32.xlu0 %v203_v11, 320 }
  0x92   :  { %249 = vbcast.lane.b32.xlu1 %v203_v11, 344  ;;  %245 = vbcast.lane.b32.xlu0 %v203_v11, 336 }
  0x96   :  { %257 = vbcast.lane.b32.xlu1 %v203_v11, 360  ;;  %253 = vbcast.lane.b32.xlu0 %v203_v11, 352 }
  0x9a   :  { %265 = vbcast.lane.b32.xlu1 %v203_v11, 376  ;;  %261 = vbcast.lane.b32.xlu0 %v203_v11, 368 }
  0x9e   :  { %276 = vbcast.lane.b32.xlu1 %v2399_v12, 264  ;;  %272 = vbcast.lane.b32.xlu0 %v2399_v12, 256 }
  0xa2   :  { %284 = vbcast.lane.b32.xlu1 %v2399_v12, 280  ;;  %280 = vbcast.lane.b32.xlu0 %v2399_v12, 272 }
  0xa6   :  { %292 = vbcast.lane.b32.xlu1 %v2399_v12, 296  ;;  %288 = vbcast.lane.b32.xlu0 %v2399_v12, 288 }
  0xaa   :  { %300 = vbcast.lane.b32.xlu1 %v2399_v12, 312  ;;  %296 = vbcast.lane.b32.xlu0 %v2399_v12, 304 }
  0xae   :  { %308 = vbcast.lane.b32.xlu1 %v2399_v12, 328  ;;  %304 = vbcast.lane.b32.xlu0 %v2399_v12, 320 }
  0xb0   :  { %v2430_v19 = vpop.permute.xlu1 %79  ;;  %v2432_v20 = vpop.permute.xlu0 %71 }
  0xb2   :  { %316 = vbcast.lane.b32.xlu1 %v2399_v12, 344  ;;  %312 = vbcast.lane.b32.xlu0 %v2399_v12, 336 }
  0xb4   :  { %v2436_v21 = vpop.permute.xlu1 %83  ;;  %v2438_v22 = vpop.permute.xlu0 %75 }
  0xb6   :  { %324 = vbcast.lane.b32.xlu1 %v2399_v12, 360  ;;  %320 = vbcast.lane.b32.xlu0 %v2399_v12, 352 }
  0xb8   :  { %v2442_v23 = vpop.permute.xlu1 %91  ;;  %v2444_v24 = vpop.permute.xlu0 %87 }
  0xba   :  { %332 = vbcast.lane.b32.xlu1 %v2399_v12, 376  ;;  %328 = vbcast.lane.b32.xlu0 %v2399_v12, 368  ;;  %v2576_v12 = vrot.slane %v2555_v61, %v135_v17 }
  0xbc   :  { %v2448_v25 = vpop.permute.xlu1 %99  ;;  %v2450_v26 = vpop.permute.xlu0 %95 }
  0xbe   :  { %343 = vbcast.lane.b32.xlu1 %v2403_v13, 264  ;;  %339 = vbcast.lane.b32.xlu0 %v2403_v13, 256 }
  0xc0   :  { %v2454_v27 = vpop.permute.xlu1 %107  ;;  %v2456_v28 = vpop.permute.xlu0 %103 }
  0xc1   :  { %3966 = vst [vmem:[#allocation14_spill] sm:$0xff] %v2454_v27 }
  0xc2   :  { %351 = vbcast.lane.b32.xlu1 %v2403_v13, 280  ;;  %347 = vbcast.lane.b32.xlu0 %v2403_v13, 272 }
  0xc4   :  { %v2460_v29 = vpop.permute.xlu1 %115  ;;  %v2462_v30 = vpop.permute.xlu0 %111 }
  0xc5   :  { %3967 = vst [vmem:[#allocation15_spill] sm:$0xff] %v2460_v29  ;;  %3968 = vst [vmem:[#allocation16_spill] sm:$0xff] %v2462_v30 }
  0xc6   :  { %359 = vbcast.lane.b32.xlu1 %v2403_v13, 296  ;;  %355 = vbcast.lane.b32.xlu0 %v2403_v13, 288 }
  0xc8   :  { %v2466_v31 = vpop.permute.xlu1 %123  ;;  %v2468_v32 = vpop.permute.xlu0 %119 }
  0xc9   :  { %3969 = vst [vmem:[#allocation17_spill] sm:$0xff] %v2466_v31  ;;  %3970 = vst [vmem:[#allocation18_spill] sm:$0xff] %v2468_v32 }
  0xca   :  { %367 = vbcast.lane.b32.xlu1 %v2403_v13, 312  ;;  %363 = vbcast.lane.b32.xlu0 %v2403_v13, 304 }
  0xcc   :  { %v2472_v33 = vpop.permute.xlu1 %131  ;;  %v2474_v34 = vpop.permute.xlu0 %127 }
  0xcd   :  { %3971 = vst [vmem:[#allocation19_spill] sm:$0xff] %v2472_v33  ;;  %3972 = vst [vmem:[#allocation20_spill] sm:$0xff] %v2474_v34 }
  0xce   :  { %375 = vbcast.lane.b32.xlu1 %v2403_v13, 328  ;;  %371 = vbcast.lane.b32.xlu0 %v2403_v13, 320 }
  0xd0   :  { %v2478_v35 = vpop.permute.xlu1 %142  ;;  %v2480_v36 = vpop.permute.xlu0 %138 }
  0xd2   :  { %383 = vbcast.lane.b32.xlu1 %v2403_v13, 344  ;;  %379 = vbcast.lane.b32.xlu0 %v2403_v13, 336 }
  0xd4   :  { %v2484_v37 = vpop.permute.xlu1 %150  ;;  %v2486_v38 = vpop.permute.xlu0 %146 }
  0xd6   :  { %391 = vbcast.lane.b32.xlu1 %v2403_v13, 360  ;;  %387 = vbcast.lane.b32.xlu0 %v2403_v13, 352 }
  0xd8   :  { %v2490_v39 = vpop.permute.xlu1 %158  ;;  %v2492_v40 = vpop.permute.xlu0 %154 }
  0xda   :  { %399 = vbcast.lane.b32.xlu1 %v2403_v13, 376  ;;  %395 = vbcast.lane.b32.xlu0 %v2403_v13, 368 }
  0xdc   :  { %v2496_v41 = vpop.permute.xlu1 %166  ;;  %v2498_v42 = vpop.permute.xlu0 %162 }
  0xde   :  { %410 = vbcast.lane.b32.xlu1 %v2407_v14, 264  ;;  %406 = vbcast.lane.b32.xlu0 %v2407_v14, 256 }
  0xe0   :  { %v2502_v43 = vpop.permute.xlu1 %174  ;;  %v2504_v44 = vpop.permute.xlu0 %170 }
  0xe1   :  { %3973 = vst [vmem:[#allocation21_spill] sm:$0xff] %v2502_v43 }
  0xe2   :  { %418 = vbcast.lane.b32.xlu1 %v2407_v14, 280  ;;  %414 = vbcast.lane.b32.xlu0 %v2407_v14, 272 }
  0xe4   :  { %v2508_v45 = vpop.permute.xlu1 %182  ;;  %v2510_v46 = vpop.permute.xlu0 %178 }
  0xe5   :  { %3974 = vst [vmem:[#allocation22_spill] sm:$0xff] %v2508_v45  ;;  %3975 = vst [vmem:[#allocation23_spill] sm:$0xff] %v2510_v46 }
  0xe6   :  { %426 = vbcast.lane.b32.xlu1 %v2407_v14, 296  ;;  %422 = vbcast.lane.b32.xlu0 %v2407_v14, 288 }
  0xe8   :  { %v2514_v47 = vpop.permute.xlu1 %190  ;;  %v2516_v48 = vpop.permute.xlu0 %186 }
  0xe9   :  { %3976 = vst [vmem:[#allocation24_spill] sm:$0xff] %v2514_v47  ;;  %3977 = vst [vmem:[#allocation25_spill] sm:$0xff] %v2516_v48  ;;  %v3995_v47 = vsub.s32 5, %v2384_v1 }
  0xea   :  { %434 = vbcast.lane.b32.xlu1 %v2407_v14, 312  ;;  %430 = vbcast.lane.b32.xlu0 %v2407_v14, 304 }
  0xeb   :  { %v2644_v31 = vrot.slane %v2555_v61, %v3995_v47 }
  0xec   :  { %v2520_v49 = vpop.permute.xlu1 %198  ;;  %v2522_v50 = vpop.permute.xlu0 %194 }
  0xed   :  { %3978 = vst [vmem:[#allocation26_spill] sm:$0xff] %v2520_v49  ;;  %3979 = vst [vmem:[#allocation27_spill] sm:$0xff] %v2522_v50 }
  0xee   :  { %442 = vbcast.lane.b32.xlu1 %v2407_v14, 328  ;;  %438 = vbcast.lane.b32.xlu0 %v2407_v14, 320 }
  0xf0   :  { %v2526_v51 = vpop.permute.xlu1 %209  ;;  %v2528_v52 = vpop.permute.xlu0 %205 }
  0xf2   :  { %450 = vbcast.lane.b32.xlu1 %v2407_v14, 344  ;;  %446 = vbcast.lane.b32.xlu0 %v2407_v14, 336 }
  0xf4   :  { %v2532_v53 = vpop.permute.xlu1 %217  ;;  %v2534_v54 = vpop.permute.xlu0 %213 }
  0xf6   :  { %458 = vbcast.lane.b32.xlu1 %v2407_v14, 360  ;;  %454 = vbcast.lane.b32.xlu0 %v2407_v14, 352 }
  0xf8   :  { %v2538_v55 = vpop.permute.xlu1 %225  ;;  %v2540_v56 = vpop.permute.xlu0 %221 }
  0xfa   :  { %466 = vbcast.lane.b32.xlu1 %v2407_v14, 376  ;;  %462 = vbcast.lane.b32.xlu0 %v2407_v14, 368  ;;  %v2587_v14 = vrot.slane %v2555_v61, %v202_v3  ;;  %v2604_v3 = vrot.slane %v2555_v61, %v269_v4 }
  0xfc   :  { %v2544_v57 = vpop.permute.xlu1 %233  ;;  %v2546_v58 = vpop.permute.xlu0 %229 }
  0xfe   :  { %477 = vbcast.lane.b32.xlu1 %v2411_v15, 264  ;;  %473 = vbcast.lane.b32.xlu0 %v2411_v15, 256 }
 0x100   :  { %v2550_v59 = vpop.permute.xlu1 %241  ;;  %v2552_v60 = vpop.permute.xlu0 %237 }
 0x101   :  { %3980 = vst [vmem:[#allocation28_spill] sm:$0xff] %v2550_v59  ;;  %3981 = vst [vmem:[#allocation29_spill] sm:$0xff] %v2552_v60 }
 0x102   :  { %485 = vbcast.lane.b32.xlu1 %v2411_v15, 280  ;;  %481 = vbcast.lane.b32.xlu0 %v2411_v15, 272 }
 0x104   :  { %v2558_v62 = vpop.permute.xlu1 %249  ;;  %v2560_v63 = vpop.permute.xlu0 %245 }
 0x105   :  { %3982 = vst [vmem:[#allocation30_spill] sm:$0xff] %v2558_v62  ;;  %3983 = vst [vmem:[#allocation31_spill] sm:$0xff] %v2560_v63 }
 0x106   :  { %493 = vbcast.lane.b32.xlu1 %v2411_v15, 296  ;;  %489 = vbcast.lane.b32.xlu0 %v2411_v15, 288 }
 0x108   :  { %v2569_v10 = vpop.permute.xlu1 %257  ;;  %v2571_v11 = vpop.permute.xlu0 %253 }
 0x109   :  { %3985 = vst [vmem:[#allocation33_spill] sm:$0xff] %v2569_v10  ;;  %3986 = vst [vmem:[#allocation34_spill] sm:$0xff] %v2571_v11 }
 0x10a   :  { %995 = vbcast.lane.b32.xlu1 %v2565_v9, 264  ;;  %991 = vbcast.lane.b32.xlu0 %v2565_v9, 256 }
 0x10c   :  { %v2580_v13 = vpop.permute.xlu1 %265  ;;  %v2582_v2 = vpop.permute.xlu0 %261 }
 0x10d   :  { %3987 = vst [vmem:[#allocation35_spill] sm:$0xff] %v2580_v13  ;;  %3988 = vst [vmem:[#allocation36_spill] sm:$0xff] %v2582_v2  ;;  %v2615_v13 = vrot.slane %v2555_v61, %v336_v5 }
 0x10e   :  { %1062 = vbcast.lane.b32.xlu1 %v2576_v12, 264  ;;  %1058 = vbcast.lane.b32.xlu0 %v2576_v12, 256 }
 0x110   :  { %v2591_v18 = vpop.permute.xlu1 %276  ;;  %v2593_v17 = vpop.permute.xlu0 %272 }
 0x112   :  { %1129 = vbcast.lane.b32.xlu1 %v2587_v14, 264  ;;  %1125 = vbcast.lane.b32.xlu0 %v2587_v14, 256 }
 0x114   :  { %v2597_v0 = vpop.permute.xlu1 %284  ;;  %v2599_v8 = vpop.permute.xlu0 %280 }
 0x116   :  { %1066 = vbcast.lane.b32.xlu1 %v2576_v12, 272  ;;  %999 = vbcast.lane.b32.xlu0 %v2565_v9, 272 }
 0x118   :  { %v2608_v7 = vpop.permute.xlu1 %292  ;;  %v2610_v6 = vpop.permute.xlu0 %288 }
 0x11a   :  { %1196 = vbcast.lane.b32.xlu1 %v2604_v3, 264  ;;  %1192 = vbcast.lane.b32.xlu0 %v2604_v3, 256 }
 0x11c   :  { %v2619_v49 = vpop.permute.xlu1 %300  ;;  %v2621_v4 = vpop.permute.xlu0 %296 }
 0x11e   :  { %1259 = vbcast.lane.b32.xlu1 %v2615_v13, 256  ;;  %1133 = vbcast.lane.b32.xlu0 %v2587_v14, 272 }
 0x120   :  { %v2625_v33 = vpop.permute.xlu1 %308  ;;  %v2627_v2 = vpop.permute.xlu0 %304 }
 0x121   :  { %3989 = vst [vmem:[#allocation37_spill] sm:$0xff] %v2625_v33  ;;  %3990 = vst [vmem:[#allocation38_spill] sm:$0xff] %v2627_v2 }
 0x122   :  { %540 = vbcast.lane.b32.xlu1 %v2415_v16, 256  ;;  %1263 = vbcast.lane.b32.xlu0 %v2615_v13, 264 }
 0x124   :  { %v2631_v5 = vpop.permute.xlu1 %316  ;;  %v2633_v50 = vpop.permute.xlu0 %312 }
 0x125   :  { %3991 = vst [vmem:[#allocation39_spill] sm:$0xff] %v2631_v5  ;;  %3992 = vst [vmem:[#allocation40_spill] sm:$0xff] %v2633_v50  ;;  %v3998_v5 = vsub.s32 6, %v2384_v1  ;;  %v4000_v50 = vsub.s32 7, %v2384_v1 }
 0x126   :  { %1003 = vbcast.lane.b32.xlu1 %v2565_v9, 280  ;;  %544 = vbcast.lane.b32.xlu0 %v2415_v16, 264 }
 0x127   :  { %v2661_v47 = vrot.slane %v2555_v61, %v3998_v5  ;;  %v2684_v29 = vrot.slane %v2555_v61, %v4000_v50 }
 0x128   :  { %v2637_v34 = vpop.permute.xlu1 %324  ;;  %v2639_v10 = vpop.permute.xlu0 %320 }
 0x129   :  { %3993 = vst [vmem:[#allocation41_spill] sm:$0xff] %v2637_v34  ;;  %3994 = vst [vmem:[#allocation42_spill] sm:$0xff] %v2639_v10 }
 0x12a   :  { %1200 = vbcast.lane.b32.xlu1 %v2604_v3, 272  ;;  %1070 = vbcast.lane.b32.xlu0 %v2576_v12, 280 }
 0x12c   :  { %v2648_v11 = vpop.permute.xlu1 %332  ;;  %v2650_v48 = vpop.permute.xlu0 %328 }
 0x12d   :  { %3996 = vst [vmem:[#allocation43_spill] sm:$0xff] %v2648_v11  ;;  %3997 = vst [vmem:[#allocation44_spill] sm:$0xff] %v2650_v48 }
 0x12e   :  { %1330 = vbcast.lane.b32.xlu1 %v2644_v31, 264  ;;  %1326 = vbcast.lane.b32.xlu0 %v2644_v31, 256 }
 0x130   :  { %v2654_v34 = vpop.permute.xlu1 %343  ;;  %v2656_v10 = vpop.permute.xlu0 %339 }
 0x132   :  { %1267 = vbcast.lane.b32.xlu1 %v2615_v13, 272  ;;  %1137 = vbcast.lane.b32.xlu0 %v2587_v14, 280 }
 0x134   :  { %v2665_v11 = vpop.permute.xlu1 %351  ;;  %v2667_v48 = vpop.permute.xlu0 %347 }
 0x136   :  { %1397 = vbcast.lane.b32.xlu1 %v2661_v47, 264  ;;  %1393 = vbcast.lane.b32.xlu0 %v2661_v47, 256 }
 0x138   :  { %v2671_v32 = vpop.permute.xlu1 %359  ;;  %v2673_v62 = vpop.permute.xlu0 %355 }
 0x13a   :  { %1007 = vbcast.lane.b32.xlu1 %v2565_v9, 288  ;;  %548 = vbcast.lane.b32.xlu0 %v2415_v16, 272 }
 0x13c   :  { %v2677_v5 = vpop.permute.xlu1 %367  ;;  %v2679_v45 = vpop.permute.xlu0 %363 }
 0x13d   :  { %3999 = vst [vmem:[#allocation45_spill] sm:$0xff] %v2677_v5 }
 0x13e   :  { %1204 = vbcast.lane.b32.xlu1 %v2604_v3, 280  ;;  %1074 = vbcast.lane.b32.xlu0 %v2576_v12, 288 }
 0x140   :  { %v2688_v63 = vpop.permute.xlu1 %375  ;;  %v2690_v46 = vpop.permute.xlu0 %371 }
 0x141   :  { %4001 = vst [vmem:[#allocation46_spill] sm:$0xff] %v2688_v63  ;;  %4002 = vst [vmem:[#allocation47_spill] sm:$0xff] %v2690_v46 }
 0x142   :  { %1460 = vbcast.lane.b32.xlu1 %v2684_v29, 256  ;;  %1334 = vbcast.lane.b32.xlu0 %v2644_v31, 272 }
 0x144   :  { %v2694_v33 = vpop.permute.xlu1 %383  ;;  %v2696_v30 = vpop.permute.xlu0 %379 }
 0x145   :  { %4003 = vst [vmem:[#allocation48_spill] sm:$0xff] %v2694_v33  ;;  %4004 = vst [vmem:[#allocation49_spill] sm:$0xff] %v2696_v30 }
 0x146   :  { %1141 = vbcast.lane.b32.xlu1 %v2587_v14, 288  ;;  %1464 = vbcast.lane.b32.xlu0 %v2684_v29, 264 }
 0x148   :  { %v2700_v1 = vpop.permute.xlu1 %391  ;;  %v2702_v50 = vpop.permute.xlu0 %387 }
 0x149   :  { %4005 = vst [vmem:[#allocation50_spill] sm:$0xff] %v2700_v1  ;;  %4006 = vst [vmem:[#allocation51_spill] sm:$0xff] %v2702_v50 }
 0x14a   :  { %1401 = vbcast.lane.b32.xlu1 %v2661_v47, 272  ;;  %1271 = vbcast.lane.b32.xlu0 %v2615_v13, 280 }
 0x14c   :  { %v2706_v61 = vpop.permute.xlu1 %399  ;;  %v2708_v63 = vpop.permute.xlu0 %395 }
 0x14d   :  { %4007 = vst [vmem:[#allocation52_spill] sm:$0xff] %v2706_v61  ;;  %4008 = vst [vmem:[#allocation53_spill] sm:$0xff] %v2708_v63 }
 0x14e   :  { %1011 = vbcast.lane.b32.xlu1 %v2565_v9, 296  ;;  %552 = vbcast.lane.b32.xlu0 %v2415_v16, 280 }
 0x150   :  { %v2712_v33 = vpop.permute.xlu1 %410  ;;  %v2714_v30 = vpop.permute.xlu0 %406 }
 0x152   :  { %1208 = vbcast.lane.b32.xlu1 %v2604_v3, 288  ;;  %1078 = vbcast.lane.b32.xlu0 %v2576_v12, 296 }
 0x154   :  { %v2718_v1 = vpop.permute.xlu1 %418  ;;  %v2720_v50 = vpop.permute.xlu0 %414 }
 0x156   :  { %1468 = vbcast.lane.b32.xlu1 %v2684_v29, 272  ;;  %1338 = vbcast.lane.b32.xlu0 %v2644_v31, 280 }
 0x158   :  { %v2724_v61 = vpop.permute.xlu1 %426  ;;  %v2726_v63 = vpop.permute.xlu0 %422 }
 0x15a   :  { %1275 = vbcast.lane.b32.xlu1 %v2615_v13, 288  ;;  %1145 = vbcast.lane.b32.xlu0 %v2587_v14, 296 }
 0x15c   :  { %v2730_v46 = vpop.permute.xlu1 %434  ;;  %v2732_v59 = vpop.permute.xlu0 %430 }
 0x15d   :  { %4009 = vst [vmem:[#allocation54_spill] sm:$0xff] %v2730_v46  ;;  %4010 = vst [vmem:[#allocation55_spill] sm:$0xff] %v2732_v59 }
 0x15e   :  { %556 = vbcast.lane.b32.xlu1 %v2415_v16, 288  ;;  %1405 = vbcast.lane.b32.xlu0 %v2661_v47, 280 }
 0x160   :  { %v2736_v43 = vpop.permute.xlu1 %442  ;;  %v2738_v2 = vpop.permute.xlu0 %438 }
 0x161   :  { %4011 = vst [vmem:[#allocation56_spill] sm:$0xff] %v2736_v43  ;;  %4012 = vst [vmem:[#allocation57_spill] sm:$0xff] %v2738_v2 }
 0x162   :  { %1082 = vbcast.lane.b32.xlu1 %v2576_v12, 304  ;;  %1015 = vbcast.lane.b32.xlu0 %v2565_v9, 304 }
 0x164   :  { %v2742_v27 = vpop.permute.xlu1 %450  ;;  %v2744_v5 = vpop.permute.xlu0 %446 }
 0x165   :  { %4013 = vst [vmem:[#allocation58_spill] sm:$0xff] %v2742_v27  ;;  %4014 = vst [vmem:[#allocation59_spill] sm:$0xff] %v2744_v5 }
 0x166   :  { %1342 = vbcast.lane.b32.xlu1 %v2644_v31, 288  ;;  %1212 = vbcast.lane.b32.xlu0 %v2604_v3, 296 }
 0x168   :  { %v2748_v46 = vpop.permute.xlu1 %458  ;;  %v2750_v60 = vpop.permute.xlu0 %454 }
 0x169   :  { %4015 = vst [vmem:[#allocation60_spill] sm:$0xff] %v2748_v46  ;;  %4016 = vst [vmem:[#allocation61_spill] sm:$0xff] %v2750_v60 }
 0x16a   :  { %1149 = vbcast.lane.b32.xlu1 %v2587_v14, 304  ;;  %1472 = vbcast.lane.b32.xlu0 %v2684_v29, 280 }
 0x16c   :  { %v2754_v43 = vpop.permute.xlu1 %466  ;;  %v2756_v2 = vpop.permute.xlu0 %462 }
 0x16d   :  { %4017 = vst [vmem:[#allocation62_spill] sm:$0xff] %v2754_v43  ;;  %4018 = vst [vmem:[#allocation63_spill] sm:$0xff] %v2756_v2 }
 0x16e   :  { %1409 = vbcast.lane.b32.xlu1 %v2661_v47, 288  ;;  %1279 = vbcast.lane.b32.xlu0 %v2615_v13, 296 }
 0x170   :  { %v2760_v27 = vpop.permute.xlu1 %477  ;;  %v2762_v5 = vpop.permute.xlu0 %473 }
 0x171   :  { %4019 = vst [vmem:[#allocation64_spill] sm:$0xff] %v2760_v27  ;;  %4020 = vst [vmem:[#allocation65_spill] sm:$0xff] %v2762_v5 }
 0x172   :  { %1019 = vbcast.lane.b32.xlu1 %v2565_v9, 312  ;;  %560 = vbcast.lane.b32.xlu0 %v2415_v16, 296 }
 0x174   :  { %v2766_v46 = vpop.permute.xlu1 %485  ;;  %v2768_v60 = vpop.permute.xlu0 %481 }
 0x175   :  { %4021 = vst [vmem:[#allocation66_spill] sm:$0xff] %v2766_v46  ;;  %4022 = vst [vmem:[#allocation67_spill] sm:$0xff] %v2768_v60 }
 0x176   :  { %1216 = vbcast.lane.b32.xlu1 %v2604_v3, 304  ;;  %1086 = vbcast.lane.b32.xlu0 %v2576_v12, 312 }
 0x178   :  { %v2772_v43 = vpop.permute.xlu1 %493  ;;  %v2774_v2 = vpop.permute.xlu0 %489 }
 0x179   :  { %4023 = vst [vmem:[#allocation68_spill] sm:$0xff] %v2772_v43  ;;  %4024 = vst [vmem:[#allocation69_spill] sm:$0xff] %v2774_v2 }
 0x17a   :  { %1476 = vbcast.lane.b32.xlu1 %v2684_v29, 288  ;;  %1346 = vbcast.lane.b32.xlu0 %v2644_v31, 296 }
 0x17c   :  { %v2778_v59 = vpop.permute.xlu1 %995  ;;  %v2780_v5 = vpop.permute.xlu0 %991 }
 0x17d   :  { %4025 = vst [vmem:[#allocation70_spill] sm:$0xff] %v2778_v59  ;;  %4026 = vst [vmem:[#allocation71_spill] sm:$0xff] %v2780_v5 }
 0x17e   :  { %1153 = vbcast.lane.b32.xlu1 %v2587_v14, 312  ;;  %497 = vbcast.lane.b32.xlu0 %v2411_v15, 304 }
 0x180   :  { %v2784_v60 = vpop.permute.xlu1 %1062  ;;  %v2786_v46 = vpop.permute.xlu0 %1058 }
 0x181   :  { %4027 = vst [vmem:[#allocation72_spill] sm:$0xff] %v2784_v60  ;;  %4028 = vst [vmem:[#allocation73_spill] sm:$0xff] %v2786_v46 }
 0x182   :  { %1413 = vbcast.lane.b32.xlu1 %v2661_v47, 296  ;;  %1283 = vbcast.lane.b32.xlu0 %v2615_v13, 304 }
 0x184   :  { %v2790_v2 = vpop.permute.xlu1 %1129  ;;  %v2792_v43 = vpop.permute.xlu0 %1125 }
 0x185   :  { %4029 = vst [vmem:[#allocation74_spill] sm:$0xff] %v2790_v2  ;;  %4030 = vst [vmem:[#allocation75_spill] sm:$0xff] %v2792_v43 }
 0x186   :  { %1023 = vbcast.lane.b32.xlu1 %v2565_v9, 320  ;;  %564 = vbcast.lane.b32.xlu0 %v2415_v16, 304 }
 0x188   :  { %v2796_v5 = vpop.permute.xlu1 %1066  ;;  %v2798_v59 = vpop.permute.xlu0 %999 }
 0x189   :  { %4031 = vst [vmem:[#allocation76_spill] sm:$0xff] %v2796_v5  ;;  %4032 = vst [vmem:[#allocation77_spill] sm:$0xff] %v2798_v59 }
 0x18a   :  { %1220 = vbcast.lane.b32.xlu1 %v2604_v3, 312  ;;  %1090 = vbcast.lane.b32.xlu0 %v2576_v12, 320 }
 0x18c   :  { %v2802_v46 = vpop.permute.xlu1 %1196  ;;  %v2804_v60 = vpop.permute.xlu0 %1192 }
 0x18d   :  { %4033 = vst [vmem:[#allocation78_spill] sm:$0xff] %v2802_v46  ;;  %4034 = vst [vmem:[#allocation79_spill] sm:$0xff] %v2804_v60 }
 0x18e   :  { %1480 = vbcast.lane.b32.xlu1 %v2684_v29, 296  ;;  %1350 = vbcast.lane.b32.xlu0 %v2644_v31, 304 }
 0x190   :  { %v2808_v43 = vpop.permute.xlu1 %1259  ;;  %v2810_v2 = vpop.permute.xlu0 %1133 }
 0x191   :  { %4035 = vst [vmem:[#allocation80_spill] sm:$0xff] %v2808_v43  ;;  %4036 = vst [vmem:[#allocation81_spill] sm:$0xff] %v2810_v2 }
 0x192   :  { %1157 = vbcast.lane.b32.xlu1 %v2587_v14, 320  ;;  %501 = vbcast.lane.b32.xlu0 %v2411_v15, 312 }
 0x194   :  { %v2814_v59 = vpop.permute.xlu1 %540  ;;  %v2816_v5 = vpop.permute.xlu0 %1263 }
 0x195   :  { %4037 = vst [vmem:[#allocation82_spill] sm:$0xff] %v2814_v59  ;;  %4038 = vst [vmem:[#allocation83_spill] sm:$0xff] %v2816_v5 }
 0x196   :  { %1417 = vbcast.lane.b32.xlu1 %v2661_v47, 304  ;;  %1287 = vbcast.lane.b32.xlu0 %v2615_v13, 312 }
 0x198   :  { %v2820_v60 = vpop.permute.xlu1 %1003  ;;  %v2822_v46 = vpop.permute.xlu0 %544 }
 0x199   :  { %4039 = vst [vmem:[#allocation84_spill] sm:$0xff] %v2820_v60  ;;  %4040 = vst [vmem:[#allocation85_spill] sm:$0xff] %v2822_v46 }
 0x19a   :  { %1027 = vbcast.lane.b32.xlu1 %v2565_v9, 328  ;;  %568 = vbcast.lane.b32.xlu0 %v2415_v16, 312 }
 0x19c   :  { %v2826_v43 = vpop.permute.xlu1 %1200  ;;  %v2828_v2 = vpop.permute.xlu0 %1070 }
 0x19d   :  { %4041 = vst [vmem:[#allocation86_spill] sm:$0xff] %v2826_v43  ;;  %4042 = vst [vmem:[#allocation87_spill] sm:$0xff] %v2828_v2 }
 0x19e   :  { %1224 = vbcast.lane.b32.xlu1 %v2604_v3, 320  ;;  %1094 = vbcast.lane.b32.xlu0 %v2576_v12, 328 }
 0x1a0   :  { %v2832_v59 = vpop.permute.xlu1 %1330  ;;  %v2834_v5 = vpop.permute.xlu0 %1326 }
 0x1a1   :  { %4043 = vst [vmem:[#allocation88_spill] sm:$0xff] %v2832_v59  ;;  %4044 = vst [vmem:[#allocation89_spill] sm:$0xff] %v2834_v5 }
 0x1a2   :  { %1484 = vbcast.lane.b32.xlu1 %v2684_v29, 304  ;;  %1354 = vbcast.lane.b32.xlu0 %v2644_v31, 312 }
 0x1a4   :  { %v2838_v46 = vpop.permute.xlu1 %1267  ;;  %v2840_v60 = vpop.permute.xlu0 %1137 }
 0x1a5   :  { %4045 = vst [vmem:[#allocation90_spill] sm:$0xff] %v2838_v46  ;;  %4046 = vst [vmem:[#allocation91_spill] sm:$0xff] %v2840_v60 }
 0x1a6   :  { %1161 = vbcast.lane.b32.xlu1 %v2587_v14, 328  ;;  %505 = vbcast.lane.b32.xlu0 %v2411_v15, 320 }
 0x1a8   :  { %v2844_v2 = vpop.permute.xlu1 %1397  ;;  %v2846_v43 = vpop.permute.xlu0 %1393 }
 0x1a9   :  { %4047 = vst [vmem:[#allocation92_spill] sm:$0xff] %v2844_v2  ;;  %4048 = vst [vmem:[#allocation93_spill] sm:$0xff] %v2846_v43  ;;  %v4053_v2 = vlaneseq }
 0x1aa   :  { %1421 = vbcast.lane.b32.xlu1 %v2661_v47, 312  ;;  %1291 = vbcast.lane.b32.xlu0 %v2615_v13, 320 }
 0x1ab   :  { %v2865_v27 = vand.u32 127, %v4053_v2 }
 0x1ac   :  { %v2850_v5 = vpop.permute.xlu1 %1007  ;;  %v2852_v59 = vpop.permute.xlu0 %548 }
 0x1ad   :  { %4049 = vst [vmem:[#allocation94_spill] sm:$0xff] %v2850_v5  ;;  %4050 = vst [vmem:[#allocation95_spill] sm:$0xff] %v2852_v59  ;;  %vm604_vm0 = vcmp.eq.s32.totalorder %v2430_v19, %v2865_v27  ;;  %vm602_vm1 = vcmp.eq.s32.totalorder %v2432_v20, %v2865_v27  ;;  %vm605_vm2 = vcmp.eq.s32.totalorder %v2436_v21, %v2865_v27  ;;  %v3959_v20 = vmov 0.0  }
 0x1ae   :  { %1031 = vbcast.lane.b32.xlu1 %v2565_v9, 336  ;;  %572 = vbcast.lane.b32.xlu0 %v2415_v16, 320  ;;  %vm603_vm3 = vcmp.eq.s32.totalorder %v2438_v22, %v2865_v27  ;;  %vm607_vm4 = vcmp.eq.s32.totalorder %v2442_v23, %v2865_v27  ;;  %vm606_vm5 = vcmp.eq.s32.totalorder %v2444_v24, %v2865_v27  ;;  %v2900_v22 = vsel %vm602_vm1, 1.0, %v3959_v20 }
 0x1af   :  { %vm609_vm6 = vcmp.eq.s32.totalorder %v2448_v25, %v2865_v27  ;;  %vm608_vm7 = vcmp.eq.s32.totalorder %v2450_v26, %v2865_v27  ;;  %vm610_vm8 = vcmp.eq.s32.totalorder %v2456_v28, %v2865_v27  ;;  %vm619_vm9 = vcmp.eq.s32.totalorder %v2478_v35, %v2865_v27 }
 0x1b0   :  { %v2856_v60 = vpop.permute.xlu1 %1204  ;;  %v2858_v46 = vpop.permute.xlu0 %1074  ;;  %vm618_vm10 = vcmp.eq.s32.totalorder %v2480_v36, %v2865_v27  ;;  %v2906_v24 = vsel %vm604_vm0, 1.0, %v3959_v20  ;;  %v2917_v35 = vsel %vm605_vm2, 1.0, %v3959_v20  ;;  %v2928_v19 = vsel %vm607_vm4, 1.0, %v3959_v20 }
 0x1b1   :  { %4051 = vst [vmem:[#allocation96_spill] sm:$0xff] %v2858_v46  ;;  %v2938_v21 = vsel %vm608_vm7, 1.0, %v3959_v20  ;;  %v2950_v23 = vsel %vm610_vm8, 1.0, %v3959_v20  ;;  %vm621_vm11 = vcmp.eq.s32.totalorder %v2484_v37, %v2865_v27  ;;  %vm620_vm12 = vcmp.eq.s32.totalorder %v2486_v38, %v2865_v27 }
 0x1b2   :  { %1228 = vbcast.lane.b32.xlu1 %v2604_v3, 328  ;;  %1098 = vbcast.lane.b32.xlu0 %v2576_v12, 336  ;;  %4058 = vst [vmem:[#allocation102_spill] sm:$0xff] %v2938_v21  ;;  %4060 = vst [vmem:[#allocation104_spill] sm:$0xff] %v2950_v23  ;;  %vm623_vm13 = vcmp.eq.s32.totalorder %v2490_v39, %v2865_v27  ;;  %v2962_v25 = vsel %vm618_vm10, 1.0, %v3959_v20  ;;  %vm622_vm14 = vcmp.eq.s32.totalorder %v2492_v40, %v2865_v27  ;;  %v4086_v21 = vld [vmem:[#allocation71_spill] sm:$0xff] }
 0x1b3   :  { %vm625_vm15 = vcmp.eq.s32.totalorder %v2496_v41, %v2865_v27  ;;  %vm624_vm0 = vcmp.eq.s32.totalorder %v2498_v42, %v2865_v27  ;;  %vm626_vm1 = vcmp.eq.s32.totalorder %v2504_v44, %v2865_v27  ;;  %vm635_vm2 = vcmp.eq.s32.totalorder %v2526_v51, %v2865_v27 }
 0x1b4   :  { %v2862_v43 = vpop.permute.xlu1 %1460  ;;  %v2867_v5 = vpop.permute.xlu0 %1334  ;;  %vm637_vm4 = vcmp.eq.s32.totalorder %v2532_v53, %v2865_v27  ;;  %v2988_v36 = vsel %vm620_vm12, 1.0, %v3959_v20  ;;  %v2994_v38 = vsel %vm621_vm11, 1.0, %v3959_v20  ;;  %v3001_v40 = vsel %vm623_vm13, 1.0, %v3959_v20 }
 0x1b5   :  { %4052 = vst [vmem:[#allocation97_spill] sm:$0xff] %v2862_v43  ;;  %4054 = vst [vmem:[#allocation98_spill] sm:$0xff] %v2867_v5  ;;  %v2911_v5 = vsel %vm603_vm3, 1.0, %v3959_v20  ;;  %vm634_vm3 = vcmp.eq.s32.totalorder %v2528_v52, %v2865_v27  ;;  %v3004_v42 = vsel %vm622_vm14, 1.0, %v3959_v20  ;;  %v3008_v51 = vsel %vm624_vm0, 1.0, %v3959_v20 }
 0x1b6   :  { %1488 = vbcast.lane.b32.xlu1 %v2684_v29, 312  ;;  %1358 = vbcast.lane.b32.xlu0 %v2644_v31, 320  ;;  %4061 = vst [vmem:[#allocation105_spill] sm:$0xff] %v3001_v40  ;;  %4062 = vst [vmem:[#allocation106_spill] sm:$0xff] %v3008_v51  ;;  %v3014_v37 = vsel %vm625_vm15, 1.0, %v3959_v20  ;;  %v3020_v39 = vsel %vm626_vm1, 1.0, %v3959_v20  ;;  %vm638_vm7 = vcmp.eq.s32.totalorder %v2540_v56, %v2865_v27 }
 0x1b7   :  { %4063 = vst [vmem:[#allocation107_spill] sm:$0xff] %v3014_v37  ;;  %4064 = vst [vmem:[#allocation108_spill] sm:$0xff] %v3020_v39  ;;  %v3023_v52 = vsel %vm635_vm2, 1.0, %v3959_v20  ;;  %v3035_v41 = vsel %vm637_vm4, 1.0, %v3959_v20  ;;  %vm641_vm8 = vcmp.eq.s32.totalorder %v2544_v57, %v2865_v27  ;;  %vm651_vm10 = vcmp.eq.s32.totalorder %v2591_v18, %v2865_v27  ;;  %v4087_v40 = vld [vmem:[#allocation72_spill] sm:$0xff] }
 0x1b8   :  { %v2871_v59 = vpop.permute.xlu1 %1141  ;;  %v2877_v46 = vpop.permute.xlu0 %1464  ;;  %vm650_vm11 = vcmp.eq.s32.totalorder %v2593_v17, %v2865_v27  ;;  %vm653_vm12 = vcmp.eq.s32.totalorder %v2597_v0, %v2865_v27  ;;  %vm652_vm13 = vcmp.eq.s32.totalorder %v2599_v8, %v2865_v27  ;;  %vm655_vm14 = vcmp.eq.s32.totalorder %v2608_v7, %v2865_v27 }
 0x1b9   :  { %4055 = vst [vmem:[#allocation99_spill] sm:$0xff] %v2871_v59  ;;  %v2920_v59 = vsel %vm606_vm5, 1.0, %v3959_v20  ;;  %vm636_vm5 = vcmp.eq.s32.totalorder %v2534_v54, %v2865_v27  ;;  %v3026_v54 = vsel %vm634_vm3, 1.0, %v3959_v20  ;;  %vm654_vm15 = vcmp.eq.s32.totalorder %v2610_v6, %v2865_v27 }
 0x1ba   :  { %1165 = vbcast.lane.b32.xlu1 %v2587_v14, 336  ;;  %509 = vbcast.lane.b32.xlu0 %v2411_v15, 328  ;;  %v3029_v23 = vsel %vm636_vm5, 1.0, %v3959_v20  ;;  %vm657_vm0 = vcmp.eq.s32.totalorder %v2619_v49, %v2865_v27  ;;  %vm656_vm1 = vcmp.eq.s32.totalorder %v2621_v4, %v2865_v27  ;;  %vm667_vm2 = vcmp.eq.s32.totalorder %v2654_v34, %v2865_v27 }
 0x1bb   :  { %v3077_v8 = vsel %vm638_vm7, 1.0, %v3959_v20  ;;  %v3091_v18 = vsel %vm641_vm8, 1.0, %v3959_v20  ;;  %v2119_v17 = vsel %vm651_vm10, 1.0, %v3959_v20  ;;  %v2118_v56 = vsel %vm650_vm11, 1.0, %v3959_v20 }
 0x1bc   :  { %v2908_v2 = vpop.permute.xlu1 %1401  ;;  %v2922_v43 = vpop.permute.xlu0 %1271  ;;  %4068 = vst [vmem:[#allocation112_spill] sm:$0xff] %v3091_v18  ;;  %v3096_v4 = vsel %vm652_vm13, 1.0, %v3959_v20  ;;  %v3107_v51 = vsel %vm654_vm15, 1.0, %v3959_v20  ;;  %v3114_v57 = vsel %vm655_vm14, 1.0, %v3959_v20  ;;  %v3123_v0 = vsel %vm657_vm0, 1.0, %v3959_v20  ;;  %v4082_v18 = vld [vmem:[#allocation66_spill] sm:$0xff] }
 0x1bd   :  { %4056 = vst [vmem:[#allocation100_spill] sm:$0xff] %v2908_v2  ;;  %4057 = vst [vmem:[#allocation101_spill] sm:$0xff] %v2922_v43  ;;  %v2931_v2 = vsel %vm619_vm9, 1.0, %v3959_v20  ;;  %v2944_v43 = vsel %vm609_vm6, 1.0, %v3959_v20  ;;  %vm639_vm6 = vcmp.eq.s32.totalorder %v2538_v55, %v2865_v27  ;;  %vm640_vm9 = vcmp.eq.s32.totalorder %v2546_v58, %v2865_v27 }
 0x1be   :  { %1425 = vbcast.lane.b32.xlu1 %v2661_v47, 320  ;;  %4059 = vst [vmem:[#allocation103_spill] sm:$0xff] %v2944_v43  ;;  %1295 = vbcast.lane.b32.xlu0 %v2615_v13, 328  ;;  %v3051_v53 = vsel %vm639_vm6, 1.0, %v3959_v20  ;;  %v3085_v6 = vsel %vm640_vm9, 1.0, %v3959_v20  ;;  %v3102_v58 = vsel %vm653_vm12, 1.0, %v3959_v20  ;;  %vm666_vm3 = vcmp.eq.s32.totalorder %v2656_v10, %v2865_v27 }
 0x1bf   :  { %4067 = vst [vmem:[#allocation111_spill] sm:$0xff] %v3085_v6  ;;  %4070 = vst [vmem:[#allocation114_spill] sm:$0xff] %v3107_v51  ;;  %v3117_v43 = vsel %vm656_vm1, 1.0, %v3959_v20  ;;  %vm669_vm4 = vcmp.eq.s32.totalorder %v2665_v11, %v2865_v27  ;;  %vm668_vm5 = vcmp.eq.s32.totalorder %v2667_v48, %v2865_v27  ;;  %vm1650_vm6 = vcmask 130048   ;;  %v4088_v51 = vld [vmem:[#allocation73_spill] sm:$0xff]  ;;  %v4104_v6 = vld [vmem:[#allocation84_spill] sm:$0xff] }
 0x1c0   :  { %v2973_v26 = vpop.permute.xlu1 %1011  ;;  %v2983_v28 = vpop.permute.xlu0 %552  ;;  %4071 = vst [vmem:[#allocation115_spill] sm:$0xff] %v3114_v57  ;;  %4072 = vst [vmem:[#allocation116_spill] sm:$0xff] %v3117_v43  ;;  %v3135_v7 = vsel %vm667_vm2, 1.0, %v3959_v20  ;;  %vm671_vm7 = vcmp.eq.s32.totalorder %v2671_v32, %v2865_v27  ;;  %vm670_vm8 = vcmp.eq.s32.totalorder %v2673_v62, %v2865_v27  ;;  %vm672_vm9 = vcmp.eq.s32.totalorder %v2679_v45, %v2865_v27  ;;  %v4081_v57 = vld [vmem:[#allocation65_spill] sm:$0xff] }
 0x1c1   :  { %4073 = vst [vmem:[#allocation117_spill] sm:$0xff] %v3123_v0  ;;  %vm683_vm10 = vcmp.eq.s32.totalorder %v2712_v33, %v2865_v27  ;;  %vm682_vm11 = vcmp.eq.s32.totalorder %v2714_v30, %v2865_v27  ;;  %vm685_vm12 = vcmp.eq.s32.totalorder %v2718_v1, %v2865_v27  ;;  %vm684_vm13 = vcmp.eq.s32.totalorder %v2720_v50, %v2865_v27 }
 0x1c2   :  { %1035 = vbcast.lane.b32.xlu1 %v2565_v9, 344  ;;  %576 = vbcast.lane.b32.xlu0 %v2415_v16, 328  ;;  %vm687_vm14 = vcmp.eq.s32.totalorder %v2724_v61, %v2865_v27  ;;  %vm686_vm15 = vcmp.eq.s32.totalorder %v2726_v63, %v2865_v27  ;;  %v3164_v33 = vsel %vm666_vm3, 1.0, %v3959_v20  ;;  %v3170_v30 = vsel %vm668_vm5, 1.0, %v3959_v20  ;;  %v4085_v61 = vld [vmem:[#allocation70_spill] sm:$0xff]  ;;  %v4090_v63 = vld [vmem:[#allocation75_spill] sm:$0xff] }
 0x1c3   :  { %v3176_v62 = vsel %vm669_vm4, 1.0, %v3959_v20  ;;  %v3180_v50 = vsel %vm683_vm10, 1.0, %v3959_v20  ;;  %v3183_v10 = vsel %vm670_vm8, 1.0, %v3959_v20  ;;  %v3190_v48 = vsel %vm671_vm7, 1.0, %v3959_v20 }
 0x1c4   :  { %v3037_v37 = vpop.permute.xlu1 %1208  ;;  %v3045_v44 = vpop.permute.xlu0 %1078  ;;  %4075 = vst [vmem:[#allocation119_spill] sm:$0xff] %v3183_v10  ;;  %4076 = vst [vmem:[#allocation120_spill] sm:$0xff] %v3190_v48  ;;  %v3196_v11 = vsel %vm672_vm9, 1.0, %v3959_v20  ;;  %v3199_v0 = vsel %vm682_vm11, 1.0, %v3959_v20  ;;  %v3202_v43 = vsel %vm684_vm13, 1.0, %v3959_v20  ;;  %v3216_v45 = vsel %vm687_vm14, 1.0, %v3959_v20 }
 0x1c5   :  { %4065 = vst [vmem:[#allocation109_spill] sm:$0xff] %v3037_v37  ;;  %4066 = vst [vmem:[#allocation110_spill] sm:$0xff] %v3045_v44  ;;  %vm698_vm1 = vcmp.eq.s32.totalorder %v4081_v57, %v2865_v27  ;;  %vm701_vm2 = vcmp.eq.s32.totalorder %v4082_v18, %v2865_v27  ;;  %v1522_v48 = vmul.f32 %v2900_v22, %v4086_v21  ;;  %v4089_v10 = vld [vmem:[#allocation74_spill] sm:$0xff] }
 0x1c6   :  { %1232 = vbcast.lane.b32.xlu1 %v2604_v3, 336  ;;  %1102 = vbcast.lane.b32.xlu0 %v2576_v12, 344  ;;  %4077 = vst [vmem:[#allocation121_spill] sm:$0xff] %v3196_v11  ;;  %4079 = vst [vmem:[#allocation123_spill] sm:$0xff] %v3216_v45  ;;  %v4080_v11 = vld [vmem:[#allocation64_spill] sm:$0xff]  ;;  %v1523_v45 = vmul.f32 %v2911_v5, %v4085_v61  ;;  %v1539_v44 = vmul.f32 %v2931_v2, %v4087_v40  ;;  %v4092_v61 = vld [vmem:[#allocation77_spill] sm:$0xff] }
 0x1c7   :  { %vm699_vm0 = vcmp.eq.s32.totalorder %v4080_v11, %v2865_v27  ;;  %v1538_v37 = vmul.f32 %v2962_v25, %v4088_v51  ;;  %v1524_v22 = vmul.f32 %v2906_v24, %v4092_v61  ;;  %v4093_v2 = vld [vmem:[#allocation78_spill] sm:$0xff]  ;;  %v4094_v40 = vld [vmem:[#allocation79_spill] sm:$0xff]  ;;  %v4095_v51 = vmov 0.0  }
 0x1c8   :  { %v3079_v55 = vpop.permute.xlu1 %1468  ;;  %v3104_v39 = vpop.permute.xlu0 %1338  ;;  %v1571_v21 = vmul.f32 %v2119_v17, %v4093_v2  ;;  %v1570_v25 = vmul.f32 %v2118_v56, %v4094_v40  ;;  %v4097_v24 = vld [vmem:[#allocation67_spill] sm:$0xff]  ;;  %v4099_v17 = vld [vmem:[#allocation69_spill] sm:$0xff]  ;;  %v3272_v56 = vsel %vm701_vm2, 1.0, %v4095_v51  ;;  %v1652_v57 = vsel %vm1650_vm6, %v1523_v45, 0.0 }
 0x1c9   :  { %4069 = vst [vmem:[#allocation113_spill] sm:$0xff] %v3104_v39  ;;  %v3208_v39 = vsel %vm685_vm12, 1.0, %v3959_v20  ;;  %vm700_vm3 = vcmp.eq.s32.totalorder %v4097_v24, %v2865_v27  ;;  %vm702_vm5 = vcmp.eq.s32.totalorder %v4099_v17, %v2865_v27  ;;  %4100 = vst [vmem:[#allocation70_spill] sm:$0xff] %v3272_v56  ;;  %v1651_v11 = vsel %vm1650_vm6, %v1522_v48, 0.0  ;;  %v4107_v17 = vld [vmem:[#allocation82_spill] sm:$0xff] }
 0x1ca   :  { %1492 = vbcast.lane.b32.xlu1 %v2684_v29, 320  ;;  %1362 = vbcast.lane.b32.xlu0 %v2644_v31, 328  ;;  %4078 = vst [vmem:[#allocation122_spill] sm:$0xff] %v3208_v39  ;;  %v3230_v39 = vsel %vm686_vm15, 1.0, %v3959_v20  ;;  %v1554_v20 = vmul.f32 %v3026_v54, %v4090_v63  ;;  %v2166_v54 = vsel %vm698_vm1, 1.0, %v4095_v51  ;;  %v1689_v63 = vsel %vm1650_vm6, %v1539_v44, 0.0 }
 0x1cb   :  { %4084 = vst [vmem:[#allocation65_spill] sm:$0xff] %v3230_v39  ;;  %v4091_v39 = vld [vmem:[#allocation76_spill] sm:$0xff]  ;;  %v1688_v61 = vsel %vm1650_vm6, %v1538_v37, 0.0  ;;  %v1763_v45 = vsel %vm1650_vm6, %v1571_v21, 0.0  ;;  %v1762_v48 = vsel %vm1650_vm6, %v1570_v25, 0.0  ;;  %v4103_v37 = vld [vmem:[#allocation83_spill] sm:$0xff]  ;;  %vm714_vm7 = vcmp.eq.s32.totalorder %v4107_v17, %v2865_v27 }
 0x1cc   :  { %v3146_v49 = vpop.permute.xlu1 %1275  ;;  %v3156_v34 = vpop.permute.xlu0 %1145  ;;  %v1540_v5 = vmul.f32 %v2988_v36, %v4091_v39  ;;  %v4098_v39 = vld [vmem:[#allocation68_spill] sm:$0xff]  ;;  %v1725_v40 = vsel %vm1650_vm6, %v1554_v20, 0.0  ;;  %v1587_v56 = vmul.f32 %v3135_v7, %v4103_v37  ;;  %v1690_v20 = vadd.f32 %v1689_v63, %v1688_v61  ;;  %v4108_v63 = vld [vmem:[#allocation85_spill] sm:$0xff] }
 0x1cd   :  { %4074 = vst [vmem:[#allocation118_spill] sm:$0xff] %v3146_v49  ;;  %v1555_v49 = vmul.f32 %v3023_v52, %v4089_v10  ;;  %v2167_v52 = vsel %vm699_vm0, 1.0, %v4095_v51  ;;  %vm703_vm4 = vcmp.eq.s32.totalorder %v4098_v39, %v2865_v27  ;;  %v3309_v7 = vsel %vm702_vm5, 1.0, %v4095_v51 }
 0x1ce   :  { %1169 = vbcast.lane.b32.xlu1 %v2587_v14, 344  ;;  %513 = vbcast.lane.b32.xlu0 %v2411_v15, 336  ;;  %v1691_v18 = vsel %vm1650_vm6, %v1540_v5, 0.0  ;;  %v1525_v5 = vmul.f32 %v2917_v35, %v4104_v6  ;;  %v3315_v35 = vsel %vm703_vm4, 1.0, %v4095_v51  ;;  %v1764_v25 = vadd.f32 %v1763_v45, %v1762_v48  ;;  %v4111_v48 = vld [vmem:[#allocation89_spill] sm:$0xff] }
 0x1cf   :  { %v1726_v2 = vsel %vm1650_vm6, %v1555_v49, 0.0  ;;  %v1653_v49 = vadd.f32 %v1652_v57, %v1651_v11  ;;  %v1692_v6 = vadd.f32 %v1691_v18, %v1690_v20  ;;  %v1800_v11 = vsel %vm1650_vm6, %v1587_v56, 0.0  ;;  %v4112_v56 = vld [vmem:[#allocation90_spill] sm:$0xff] }
 0x1d0   :  { %v3210_v32 = vpop.permute.xlu1 %556  ;;  %v3224_v1 = vpop.permute.xlu0 %1405  ;;  %v1727_v21 = vadd.f32 %v1726_v2, %v1725_v40  ;;  %vm715_vm8 = vcmp.eq.s32.totalorder %v4108_v63, %v2865_v27  ;;  %v4109_v2 = vld [vmem:[#allocation87_spill] sm:$0xff]  ;;  %v4110_v40 = vld [vmem:[#allocation88_spill] sm:$0xff]  ;;  %v1588_v37 = vmul.f32 %v3170_v30, %v4112_v56  ;;  %vm717_vm10 = vcmp.eq.s32.totalorder %v2983_v28, %v2865_v27  ;;  %v4119_v56 = vld [vmem:[#allocation97_spill] sm:$0xff] }
 0x1d1   :  { %4083 = vst [vmem:[#allocation64_spill] sm:$0xff] %v3224_v1  ;;  %v1603_v18 = vmul.f32 %v3180_v50, %v4110_v40  ;;  %v4116_v50 = vld [vmem:[#allocation94_spill] sm:$0xff]  ;;  %v2183_v30 = vsel %vm715_vm8, 1.0, %v4095_v51  ;;  %vm718_vm11 = vcmp.eq.s32.totalorder %v3210_v32, %v2865_v27 }
 0x1d2   :  { %1429 = vbcast.lane.b32.xlu1 %v2661_v47, 328  ;;  %1299 = vbcast.lane.b32.xlu0 %v2615_v13, 336  ;;  %v1526_v40 = vmul.f32 %v2920_v59, %v4116_v50  ;;  %v1802_v17 = vsel %vm1650_vm6, %v1588_v37, 0.0  ;;  %v2185_v50 = vsel %vm717_vm10, 1.0, %v4095_v51 }
 0x1d3   :  { %v1837_v59 = vsel %vm1650_vm6, %v1603_v18, 0.0  ;;  %v4118_v18 = vld [vmem:[#allocation96_spill] sm:$0xff] }
 0x1d4   :  { %v3260_v36 = vpop.permute.xlu1 %1082  ;;  %v3274_v10 = vpop.permute.xlu0 %1015 }
 0x1d5   :  { %4096 = vst [vmem:[#allocation66_spill] sm:$0xff] %v3260_v36  ;;  %4101 = vst [vmem:[#allocation71_spill] sm:$0xff] %v3274_v10  ;;  %v1654_v36 = vsel %vm1650_vm6, %v1524_v22, 0.0  ;;  %v4102_v10 = vld [vmem:[#allocation81_spill] sm:$0xff]  ;;  %v4105_v22 = vld [vmem:[#allocation86_spill] sm:$0xff] }
 0x1d6   :  { %1039 = vbcast.lane.b32.xlu1 %v2565_v9, 352  ;;  %580 = vbcast.lane.b32.xlu0 %v2415_v16, 336  ;;  %v1556_v44 = vmul.f32 %v3029_v23, %v4102_v10  ;;  %v1572_v16 = vmul.f32 %v3096_v4, %v4105_v22  ;;  %v2168_v23 = vsel %vm700_vm3, 1.0, %v4095_v51  ;;  %v1655_v4 = vadd.f32 %v1654_v36, %v1653_v49  ;;  %v4106_v10 = vld [vmem:[#allocation80_spill] sm:$0xff]  ;;  %v4113_v49 = vld [vmem:[#allocation91_spill] sm:$0xff] }
 0x1d7   :  { %v1586_v24 = vmul.f32 %v3164_v33, %v4106_v10  ;;  %v1656_v36 = vsel %vm1650_vm6, %v1525_v5, 0.0  ;;  %v1541_v33 = vmul.f32 %v2994_v38, %v4109_v2  ;;  %v1557_v20 = vmul.f32 %v3035_v41, %v4113_v49  ;;  %v4114_v22 = vld [vmem:[#allocation92_spill] sm:$0xff]  ;;  %v4115_v10 = vld [vmem:[#allocation93_spill] sm:$0xff] }
 0x1d8   :  { %v3292_v1 = vpop.permute.xlu1 %1342  ;;  %v3298_v9 = vpop.permute.xlu0 %1212  ;;  %v1728_v57 = vsel %vm1650_vm6, %v1556_v44, 0.0  ;;  %v1765_v61 = vsel %vm1650_vm6, %v1572_v16, 0.0  ;;  %v1602_v44 = vmul.f32 %v3199_v0, %v4111_v48  ;;  %v1619_v5 = vmul.f32 %v2167_v52, %v4114_v22 }
 0x1d9   :  { %v1799_v16 = vsel %vm1650_vm6, %v1586_v24, 0.0  ;;  %v1729_v38 = vadd.f32 %v1728_v57, %v1727_v21  ;;  %v1618_v2 = vmul.f32 %v2166_v54, %v4115_v10  ;;  %v1657_v48 = vadd.f32 %v1656_v36, %v1655_v4  ;;  %v4117_v24 = vld [vmem:[#allocation95_spill] sm:$0xff] }
 0x1da   :  { %1236 = vbcast.lane.b32.xlu1 %v2604_v3, 344  ;;  %1106 = vbcast.lane.b32.xlu0 %v2576_v12, 352  ;;  %v1801_v0 = vadd.f32 %v1800_v11, %v1799_v16  ;;  %v2182_v41 = vsel %vm714_vm7, 1.0, %v4095_v51  ;;  %v1766_v54 = vadd.f32 %v1765_v61, %v1764_v25  ;;  %v1693_v21 = vsel %vm1650_vm6, %v1541_v33, 0.0 }
 0x1db   :  { %vm716_vm9 = vcmp.eq.s32.totalorder %v4117_v24, %v2865_v27  ;;  %v1836_v57 = vsel %vm1650_vm6, %v1602_v44, 0.0  ;;  %v1730_v11 = vsel %vm1650_vm6, %v1557_v20, 0.0  ;;  %v1874_v63 = vsel %vm1650_vm6, %v1619_v5, 0.0 }
 0x1dc   :  { %v3326_v39 = vpop.permute.xlu1 %1149  ;;  %v1473_v45 = vpop.permute.xlu0 %1472  ;;  %v1873_v25 = vsel %vm1650_vm6, %v1618_v2, 0.0  ;;  %v1658_v36 = vsel %vm1650_vm6, %v1526_v40, 0.0  ;;  %v1635_v61 = vmul.f32 %v2183_v30, %v2877_v46  ;;  %v1573_v33 = vmul.f32 %v3102_v58, %v2856_v60  ;;  %v4120_v46 = vld [vmem:[#allocation99_spill] sm:$0xff]  ;;  %v4121_v2 = vld [vmem:[#allocation100_spill] sm:$0xff] }
 0x1dd   :  { %v1542_v44 = vmul.f32 %v3004_v42, %v4118_v18  ;;  %v1634_v37 = vmul.f32 %v2182_v41, %v4119_v56  ;;  %v2184_v49 = vsel %vm716_vm9, 1.0, %v4095_v51  ;;  %v1694_v22 = vadd.f32 %v1693_v21, %v1692_v6 }
 0x1de   :  { %1496 = vbcast.lane.b32.xlu1 %v2684_v29, 328  ;;  %1366 = vbcast.lane.b32.xlu0 %v2644_v31, 336  ;;  %v3382_v5 = vadd.f32 %v1837_v59, %v1836_v57  ;;  %v1558_v28 = vmul.f32 %v3077_v8, %v4120_v46  ;;  %v1636_v16 = vmul.f32 %v2184_v49, %v3079_v55  ;;  %v1911_v6 = vsel %vm1650_vm6, %v1635_v61, 0.0  ;;  %v4128_v49 = vld [vmem:[#allocation70_spill] sm:$0xff] }
 0x1df   :  { %v1803_v60 = vadd.f32 %v1802_v17, %v1801_v0  ;;  %v1731_v58 = vadd.f32 %v1730_v11, %v1729_v38  ;;  %v1620_v42 = vmul.f32 %v2168_v23, %v4121_v2  ;;  %v1875_v40 = vadd.f32 %v1874_v63, %v1873_v25  ;;  %v4122_v38 = vld [vmem:[#allocation98_spill] sm:$0xff]  ;;  %v4123_v11 = vld [vmem:[#allocation101_spill] sm:$0xff]  ;;  %v4124_v25 = vld [vmem:[#allocation32_spill] sm:$0xff] }
 0x1e0   :  { %v3355_v52 = vpop.permute.xlu1 %1409  ;;  %v3361_v4 = vpop.permute.xlu0 %1279  ;;  %v1659_v41 = vadd.f32 %v1658_v36, %v1657_v48  ;;  %v1637_v30 = vmul.f32 %v2185_v50, %v1473_v45  ;;  %v1767_v8 = vsel %vm1650_vm6, %v1573_v33, 0.0  ;;  %v1695_v55 = vsel %vm1650_vm6, %v1542_v44, 0.0  ;;  %v4126_v33 = vld [vmem:[#allocation13_spill] sm:$0xff]  ;;  %v4129_v2 = vld [vmem:[#allocation118_spill] sm:$0xff] }
 0x1e1   :  { %v1910_v0 = vsel %vm1650_vm6, %v1634_v37, 0.0  ;;  %v1604_v23 = vmul.f32 %v3202_v43, %v4122_v38  ;;  %v1732_v59 = vsel %vm1650_vm6, %v1558_v28, 0.0  ;;  %v1913_v48 = vsel %vm1650_vm6, %v1636_v16, 0.0  ;;  %v4127_v37 = vld [vmem:[#allocation64_spill] sm:$0xff]  ;;  %v4133_v38 = vld [vmem:[#allocation110_spill] sm:$0xff] }
 0x1e2   :  { %1173 = vbcast.lane.b32.xlu1 %v2587_v14, 352  ;;  %517 = vbcast.lane.b32.xlu0 %v2411_v15, 344  ;;  %v1559_v45 = vmul.f32 %v3051_v53, %v3156_v34  ;;  %v1912_v57 = vadd.f32 %v1911_v6, %v1910_v0  ;;  %v1876_v17 = vsel %vm1650_vm6, %v1620_v42, 0.0  ;;  %v1589_v43 = vmul.f32 %v3176_v62, %v4123_v11  ;;  %v4125_v53 = vld [vmem:[#allocation111_spill] sm:$0xff]  ;;  %v4131_v6 = vld [vmem:[#allocation109_spill] sm:$0xff] }
 0x1e3   :  { %v1527_v63 = vmul.f32 %v2928_v19, %v2973_v26  ;;  %v3415_v36 = vadd.f32 %v1767_v8, %v1766_v54  ;;  %v3417_v61 = vadd.f32 %v1695_v55, %v1694_v22  ;;  %v1560_v34 = vmul.f32 %v4125_v53, %v3326_v39  ;;  %v4130_v42 = vld [vmem:[#allocation119_spill] sm:$0xff] }
 0x1e4   :  { %v3380_v20 = vpop.permute.xlu1 %1019  ;;  %v3387_v10 = vpop.permute.xlu0 %560  ;;  %v1915_v32 = vsel %vm1650_vm6, %v1637_v30, 0.0  ;;  %v3424_v18 = vsel %vm1650_vm6, %v1604_v23, 0.0  ;;  %v1733_v62 = vadd.f32 %v1732_v59, %v1731_v58  ;;  %v1914_v44 = vadd.f32 %v1913_v48, %v1912_v57  ;;  %v4134_v23 = vld [vmem:[#allocation105_spill] sm:$0xff]  ;;  %v4136_v53 = vld [vmem:[#allocation71_spill] sm:$0xff] }
 0x1e5   :  { %v2186_v19 = vsel %vm718_vm11, 1.0, %v4095_v51  ;;  %v1877_v56 = vadd.f32 %v1876_v17, %v1875_v40  ;;  %v1734_v54 = vsel %vm1650_vm6, %v1559_v45, 0.0  ;;  %v1621_v22 = vmul.f32 %v4128_v49, %v4127_v37  ;;  %v4132_v40 = vld [vmem:[#allocation114_spill] sm:$0xff]  ;;  %v4135_v45 = vld [vmem:[#allocation120_spill] sm:$0xff] }
 0x1e6   :  { %1433 = vbcast.lane.b32.xlu1 %v2661_v47, 336  ;;  %1303 = vbcast.lane.b32.xlu0 %v2615_v13, 344  ;;  %v1804_v28 = vsel %vm1650_vm6, %v1589_v43, 0.0  ;;  %v1660_v16 = vsel %vm1650_vm6, %v1527_v63, 0.0  ;;  %v1590_v58 = vmul.f32 %v4130_v42, %v4129_v2  ;;  %v1916_v50 = vadd.f32 %v1915_v32, %v1914_v44 }
 0x1e7   :  { %v1574_v30 = vmul.f32 %v4132_v40, %v4131_v6  ;;  %v1736_v8 = vsel %vm1650_vm6, %v1560_v34, 0.0  ;;  %v1622_v55 = vmul.f32 %v3309_v7, %v3355_v52  ;;  %v1543_v59 = vmul.f32 %v4134_v23, %v4133_v38  ;;  %v4137_v34 = vld [vmem:[#allocation102_spill] sm:$0xff]  ;;  %v4138_v52 = vld [vmem:[#allocation112_spill] sm:$0xff]  ;;  %v4141_v40 = vld [vmem:[#allocation113_spill] sm:$0xff] }
 0x1e8   :  { %v3399_v21 = vpop.permute.xlu1 %1216  ;;  %v3407_v24 = vpop.permute.xlu0 %1086  ;;  %v1735_v48 = vadd.f32 %v1734_v54, %v1733_v62  ;;  %v1591_v57 = vmul.f32 %v4135_v45, %v3361_v4  ;;  %v1805_v43 = vadd.f32 %v1804_v28, %v1803_v60  ;;  %v1878_v63 = vsel %vm1650_vm6, %v1621_v22, 0.0  ;;  %v4139_v54 = vld [vmem:[#allocation103_spill] sm:$0xff]  ;;  %v4145_v23 = vld [vmem:[#allocation121_spill] sm:$0xff] }
 0x1e9   :  { %v1528_v7 = vmul.f32 %v4137_v34, %v4136_v53  ;;  %v1769_v4 = vsel %vm1650_vm6, %v1574_v30, 0.0  ;;  %v1880_v60 = vsel %vm1650_vm6, %v1622_v55, 0.0  ;;  %v1529_v37 = vmul.f32 %v4139_v54, %v3380_v20  ;;  %v4142_v30 = vld [vmem:[#allocation122_spill] sm:$0xff]  ;;  %v4149_v54 = vld [vmem:[#allocation65_spill] sm:$0xff] }
 0x1ea   :  { %1043 = vbcast.lane.b32.xlu1 %v4124_v25, 360  ;;  %584 = vbcast.lane.b32.xlu0 %v4126_v33, 344  ;;  %v1737_v62 = vadd.f32 %v1736_v8, %v1735_v48  ;;  %v1879_v22 = vadd.f32 %v1878_v63, %v1877_v56  ;;  %v1605_v8 = vmul.f32 %v4142_v30, %v4141_v40  ;;  %v4143_v55 = vld [vmem:[#allocation66_spill] sm:$0xff]  ;;  %v4152_v40 = vld [vmem:[#allocation55_spill] sm:$0xff] }
 0x1eb   :  { %v1662_v42 = vsel %vm1650_vm6, %v1528_v7, 0.0  ;;  %v1664_v45 = vsel %vm1650_vm6, %v1529_v37, 0.0  ;;  %vm719_vm14 = vcmp.eq.s32.totalorder %v3387_v10, %v2865_v27  ;;  %vm688_vm15 = vcmp.eq.s32.totalorder %v4152_v40, %v2865_v27  ;;  %v4158_v40 = vld [vmem:[#allocation21_spill] sm:$0xff] }
 0x1ec   :  { %v1477_v26 = vpop.permute.xlu1 %1476  ;;  %v3430_v39 = vpop.permute.xlu0 %1346  ;;  %v1881_v38 = vadd.f32 %v1880_v60, %v1879_v22  ;;  %vm627_vm5 = vcmp.eq.s32.totalorder %v4158_v40, %v2865_v27 }
 0x1ed   :  { %v1638_v46 = vmul.f32 %v2186_v19, %v1477_v26  ;;  %v1661_v19 = vadd.f32 %v1660_v16, %v1659_v41  ;;  %v1806_v26 = vsel %vm1650_vm6, %v1590_v58, 0.0  ;;  %v1697_v41 = vsel %vm1650_vm6, %v1543_v59, 0.0  ;;  %v4140_v58 = vld [vmem:[#allocation115_spill] sm:$0xff] }
 0x1ee   :  { %1240 = vbcast.lane.b32.xlu1 %v2604_v3, 352  ;;  %1110 = vbcast.lane.b32.xlu0 %v2576_v12, 360  ;;  %v1807_v2 = vadd.f32 %v1806_v26, %v1805_v43  ;;  %v4147_v43 = vld [vmem:[#allocation107_spill] sm:$0xff] }
 0x1ef   :  { %v1917_v0 = vsel %vm1650_vm6, %v1638_v46, 0.0  ;;  %v1808_v46 = vsel %vm1650_vm6, %v1591_v57, 0.0  ;;  %v4146_v57 = vld [vmem:[#allocation116_spill] sm:$0xff]  ;;  %v1545_v63 = vmul.f32 %v4147_v43, %v3407_v24  ;;  %v1606_v24 = vmul.f32 %v4149_v54, %v3292_v1  ;;  %v4150_v1 = vld [vmem:[#allocation123_spill] sm:$0xff] }
 0x1f0   :  { %v3448_v17 = vadd.f32 %v1917_v0, %v1916_v50  ;;  %v1154_v11 = vpop.permute.xlu1 %1153  ;;  %v3454_v44 = vpop.permute.xlu0 %497  ;;  %v1575_v50 = vmul.f32 %v4140_v58, %v3298_v9  ;;  %v4144_v0 = vld [vmem:[#allocation106_spill] sm:$0xff]  ;;  %v1809_v48 = vadd.f32 %v1808_v46, %v1807_v2  ;;  %v1576_v9 = vmul.f32 %v4146_v57, %v3399_v21  ;;  %v4148_v21 = vld [vmem:[#allocation104_spill] sm:$0xff] }
 0x1f1   :  { %v1561_v32 = vmul.f32 %v4138_v52, %v1154_v11  ;;  %vm704_vm12 = vcmp.eq.s32.totalorder %v3454_v44, %v2865_v27  ;;  %v1544_v56 = vmul.f32 %v4144_v0, %v4143_v55  ;;  %v1663_v11 = vadd.f32 %v1662_v42, %v1661_v19  ;;  %v4154_v0 = vld [vmem:[#allocation29_spill] sm:$0xff] }
 0x1f2   :  { %1500 = vbcast.lane.b32.xlu1 %v2684_v29, 336  ;;  %1370 = vbcast.lane.b32.xlu0 %v2644_v31, 344  ;;  %v1770_v52 = vadd.f32 %v1769_v4, %v3415_v36  ;;  %v1698_v36 = vadd.f32 %v1697_v41, %v3417_v61  ;;  %v1841_v4 = vsel %vm1650_vm6, %v1605_v8, 0.0  ;;  %v1607_v2 = vmul.f32 %v4150_v1, %v3430_v39  ;;  %v4153_v39 = vld [vmem:[#allocation108_spill] sm:$0xff] }
 0x1f3   :  { %v1738_v49 = vsel %vm1650_vm6, %v1561_v32, 0.0  ;;  %v1771_v32 = vsel %vm1650_vm6, %v1575_v50, 0.0  ;;  %v1699_v19 = vsel %vm1650_vm6, %v1544_v56, 0.0  ;;  %v1665_v37 = vadd.f32 %v1664_v45, %v1663_v11  ;;  %v4151_v50 = vld [vmem:[#allocation117_spill] sm:$0xff] }
 0x1f4   :  { %v3468_v28 = vadd.f32 %v1738_v49, %v1737_v62  ;;  %v1414_v16 = vpop.permute.xlu1 %1413  ;;  %v1284_v6 = vpop.permute.xlu0 %1283  ;;  %v1773_v49 = vsel %vm1650_vm6, %v1576_v9, 0.0  ;;  %v1772_v46 = vadd.f32 %v1771_v32, %v1770_v52  ;;  %v1840_v61 = vadd.f32 %v3424_v18, %v3382_v5 }
 0x1f5   :  { %v1623_v20 = vmul.f32 %v3315_v35, %v1414_v16  ;;  %v1592_v59 = vmul.f32 %v4145_v23, %v1284_v6  ;;  %v1701_v16 = vsel %vm1650_vm6, %v1545_v63, 0.0  ;;  %v1700_v41 = vadd.f32 %v1699_v19, %v1698_v36 }
 0x1f6   :  { %1177 = vbcast.lane.b32.xlu1 %v2587_v14, 360  ;;  %521 = vbcast.lane.b32.xlu0 %v2411_v15, 352  ;;  %v1843_v30 = vsel %vm1650_vm6, %v1606_v24, 0.0  ;;  %v1774_v8 = vadd.f32 %v1773_v49, %v1772_v46  ;;  %vm642_vm0 = vcmp.eq.s32.totalorder %v4154_v0, %v2865_v27  ;;  %v1842_v5 = vadd.f32 %v1841_v4, %v1840_v61  ;;  %v4155_v24 = vld [vmem:[#allocation45_spill] sm:$0xff]  ;;  %v4156_v49 = vld [vmem:[#allocation14_spill] sm:$0xff] }
 0x1f7   :  { %v1882_v35 = vsel %vm1650_vm6, %v1623_v20, 0.0  ;;  %v1810_v34 = vsel %vm1650_vm6, %v1592_v59, 0.0  ;;  %v1702_v18 = vadd.f32 %v1701_v16, %v1700_v41  ;;  %v2187_v45 = vsel %vm719_vm14, 1.0, %v4095_v51  ;;  %v4157_v41 = vld [vmem:[#allocation38_spill] sm:$0xff] }
 0x1f8   :  { %v3487_v53 = vadd.f32 %v1882_v35, %v1881_v38  ;;  %v1024_v7 = vpop.permute.xlu1 %1023  ;;  %v3492_v26 = vadd.f32 %v1810_v34, %v1809_v48  ;;  %v3495_v60 = vpop.permute.xlu0 %564  ;;  %v1845_v38 = vsel %vm1650_vm6, %v1607_v2, 0.0  ;;  %v1844_v57 = vadd.f32 %v1843_v30, %v1842_v5  ;;  %v4159_v5 = vld [vmem:[#allocation54_spill] sm:$0xff] }
 0x1f9   :  { %v1530_v62 = vmul.f32 %v4148_v21, %v1024_v7  ;;  %vm720_vm13 = vcmp.eq.s32.totalorder %v3495_v60, %v2865_v27  ;;  %v2156_v11 = vsel %vm688_vm15, 1.0, %v4095_v51  ;;  %v2110_v21 = vsel %vm642_vm0, 1.0, %v4095_v51 }
 0x1fa   :  { %1437 = vbcast.lane.b32.xlu1 %v2661_v47, 344  ;;  %1307 = vbcast.lane.b32.xlu0 %v2615_v13, 352  ;;  %v1846_v34 = vadd.f32 %v1845_v38, %v1844_v57  ;;  %vm673_vm1 = vcmp.eq.s32.totalorder %v4155_v24, %v2865_v27  ;;  %v2172_v4 = vsel %vm704_vm12, 1.0, %v4095_v51  ;;  %vm611_vm3 = vcmp.eq.s32.totalorder %v4156_v49, %v2865_v27  ;;  %v4162_v24 = vld [vmem:[#allocation16_spill] sm:$0xff] }
 0x1fb   :  { %v1666_v22 = vsel %vm1650_vm6, %v1530_v62, 0.0  ;;  %v2141_v46 = vsel %vm673_vm1, 1.0, %v4095_v51  ;;  %v2079_v44 = vsel %vm611_vm3, 1.0, %v4095_v51  ;;  %vm658_vm4 = vcmp.eq.s32.totalorder %v4157_v41, %v2865_v27 }
 0x1fc   :  { %v3511_v42 = vadd.f32 %v1666_v22, %v1665_v37  ;;  %v1221_v58 = vpop.permute.xlu1 %1220  ;;  %v1091_v6 = vpop.permute.xlu0 %1090  ;;  %vm689_vm8 = vcmp.eq.s32.totalorder %v4159_v5, %v2865_v27  ;;  %vm612_vm12 = vcmp.eq.s32.totalorder %v4162_v24, %v2865_v27  ;;  %v4169_v24 = vld [vmem:[#allocation40_spill] sm:$0xff] }
 0x1fd   :  { %v1577_v20 = vmul.f32 %v4151_v50, %v1221_v58  ;;  %v1546_v55 = vmul.f32 %v4153_v39, %v1091_v6 }
 0x1fe   :  { %1047 = vbcast.lane.b32.xlu1 %v4124_v25, 368  ;;  %588 = vbcast.lane.b32.xlu0 %v4126_v33, 352 }
 0x1ff   :  { %v1775_v56 = vsel %vm1650_vm6, %v1577_v20, 0.0  ;;  %v1703_v59 = vsel %vm1650_vm6, %v1546_v55, 0.0  ;;  %v2095_v55 = vsel %vm627_vm5, 1.0, %v4095_v51  ;;  %vm660_vm5 = vcmp.eq.s32.totalorder %v4169_v24, %v2865_v27 }
 0x200   :  { %v1776_v23 = vadd.f32 %v1775_v56, %v1774_v8  ;;  %v1481_v48 = vpop.permute.xlu1 %1480  ;;  %v1704_v9 = vadd.f32 %v1703_v59, %v1702_v18  ;;  %v1351_v43 = vpop.permute.xlu0 %1350 }
 0x201   :  { %v1639_v35 = vmul.f32 %v2187_v45, %v1481_v48  ;;  %v1608_v63 = vmul.f32 %v2156_v11, %v1351_v43  ;;  %v2188_v48 = vsel %vm720_vm13, 1.0, %v4095_v51  ;;  %v4160_v45 = vld [vmem:[#allocation28_spill] sm:$0xff] }
 0x202   :  { %1244 = vbcast.lane.b32.xlu1 %v2604_v3, 360  ;;  %1114 = vbcast.lane.b32.xlu0 %v2576_v12, 368  ;;  %vm643_vm9 = vcmp.eq.s32.totalorder %v4160_v45, %v2865_v27 }
 0x203   :  { %v1919_v7 = vsel %vm1650_vm6, %v1639_v35, 0.0  ;;  %v1847_v52 = vsel %vm1650_vm6, %v1608_v63, 0.0  ;;  %v2111_v60 = vsel %vm643_vm9, 1.0, %v4095_v51 }
 0x204   :  { %v1920_v10 = vadd.f32 %v1919_v7, %v3448_v17  ;;  %v1158_v32 = vpop.permute.xlu1 %1157  ;;  %v1848_v62 = vadd.f32 %v1847_v52, %v1846_v34  ;;  %v3546_v54 = vpop.permute.xlu0 %501 }
 0x205   :  { %v1562_v19 = vmul.f32 %v2110_v21, %v1158_v32  ;;  %vm705_vm2 = vcmp.eq.s32.totalorder %v3546_v54, %v2865_v27  ;;  %v4161_v21 = vld [vmem:[#allocation47_spill] sm:$0xff]  ;;  %v2080_v54 = vsel %vm612_vm12, 1.0, %v4095_v51 }
 0x206   :  { %1504 = vbcast.lane.b32.xlu1 %v2684_v29, 344  ;;  %1374 = vbcast.lane.b32.xlu0 %v2644_v31, 352  ;;  %vm674_vm10 = vcmp.eq.s32.totalorder %v4161_v21, %v2865_v27 }
 0x207   :  { %v1740_v17 = vsel %vm1650_vm6, %v1562_v19, 0.0 }
 0x208   :  { %v1741_v37 = vadd.f32 %v1740_v17, %v3468_v28  ;;  %v1418_v36 = vpop.permute.xlu1 %1417  ;;  %v1288_v16 = vpop.permute.xlu0 %1287 }
 0x209   :  { %v1624_v22 = vmul.f32 %v2172_v4, %v1418_v36  ;;  %v1593_v1 = vmul.f32 %v2141_v46, %v1288_v16  ;;  %v2142_v36 = vsel %vm674_vm10, 1.0, %v4095_v51 }
 0x20a   :  { %1181 = vbcast.lane.b32.xlu1 %v2587_v14, 368  ;;  %525 = vbcast.lane.b32.xlu0 %v2411_v15, 360 }
 0x20b   :  { %v1884_v2 = vsel %vm1650_vm6, %v1624_v22, 0.0  ;;  %v1812_v58 = vsel %vm1650_vm6, %v1593_v1, 0.0  ;;  %v4163_v1 = vld [vmem:[#allocation37_spill] sm:$0xff] }
 0x20c   :  { %v1885_v28 = vadd.f32 %v1884_v2, %v3487_v53  ;;  %v1028_v61 = vpop.permute.xlu1 %1027  ;;  %v1813_v50 = vadd.f32 %v1812_v58, %v3492_v26  ;;  %v3572_v6 = vpop.permute.xlu0 %568  ;;  %v2126_v26 = vsel %vm658_vm4, 1.0, %v4095_v51  ;;  %vm659_vm13 = vcmp.eq.s32.totalorder %v4163_v1, %v2865_v27 }
 0x20d   :  { %v1531_v20 = vmul.f32 %v2079_v44, %v1028_v61  ;;  %vm721_vm7 = vcmp.eq.s32.totalorder %v3572_v6, %v2865_v27  ;;  %v4164_v61 = vld [vmem:[#allocation23_spill] sm:$0xff]  ;;  %v2127_v41 = vsel %vm659_vm13, 1.0, %v4095_v51 }
 0x20e   :  { %1441 = vbcast.lane.b32.xlu1 %v2661_v47, 352  ;;  %1311 = vbcast.lane.b32.xlu0 %v2615_v13, 360  ;;  %vm628_vm14 = vcmp.eq.s32.totalorder %v4164_v61, %v2865_v27  ;;  %v2189_v5 = vsel %vm721_vm7, 1.0, %v4095_v51  ;;  %v4172_v61 = vld [vmem:[#allocation30_spill] sm:$0xff] }
 0x20f   :  { %v1668_v53 = vsel %vm1650_vm6, %v1531_v20, 0.0  ;;  %v2096_v40 = vsel %vm628_vm14, 1.0, %v4095_v51  ;;  %vm645_vm10 = vcmp.eq.s32.totalorder %v4172_v61, %v2865_v27 }
 0x210   :  { %v1669_v30 = vadd.f32 %v1668_v53, %v3511_v42  ;;  %v1225_v8 = vpop.permute.xlu1 %1224  ;;  %v1095_v0 = vpop.permute.xlu0 %1094 }
 0x211   :  { %v1578_v39 = vmul.f32 %v2126_v26, %v1225_v8  ;;  %v1547_v18 = vmul.f32 %v2095_v55, %v1095_v0  ;;  %v4165_v8 = vld [vmem:[#allocation57_spill] sm:$0xff] }
 0x212   :  { %1051 = vbcast.lane.b32.xlu1 %v4124_v25, 376  ;;  %592 = vbcast.lane.b32.xlu0 %v4126_v33, 360  ;;  %v2157_v25 = vsel %vm689_vm8, 1.0, %v4095_v51  ;;  %vm690_vm0 = vcmp.eq.s32.totalorder %v4165_v8, %v2865_v27 }
 0x213   :  { %v1777_v56 = vsel %vm1650_vm6, %v1578_v39, 0.0  ;;  %v1705_v42 = vsel %vm1650_vm6, %v1547_v18, 0.0  ;;  %v4166_v18 = vld [vmem:[#allocation31_spill] sm:$0xff] }
 0x214   :  { %v1778_v38 = vadd.f32 %v1777_v56, %v1776_v23  ;;  %v1485_v59 = vpop.permute.xlu1 %1484  ;;  %v1706_v57 = vadd.f32 %v1705_v42, %v1704_v9  ;;  %v1355_v11 = vpop.permute.xlu0 %1354  ;;  %vm644_vm1 = vcmp.eq.s32.totalorder %v4166_v18, %v2865_v27  ;;  %v2158_v42 = vsel %vm690_vm0, 1.0, %v4095_v51 }
 0x215   :  { %v1640_v35 = vmul.f32 %v2188_v48, %v1485_v59  ;;  %v1609_v43 = vmul.f32 %v2157_v25, %v1355_v11  ;;  %v2112_v25 = vsel %vm644_vm1, 1.0, %v4095_v51 }
 0x216   :  { %1248 = vbcast.lane.b32.xlu1 %v2604_v3, 368  ;;  %1118 = vbcast.lane.b32.xlu0 %v2576_v12, 376 }
 0x217   :  { %v1921_v23 = vsel %vm1650_vm6, %v1640_v35, 0.0  ;;  %v1849_v34 = vsel %vm1650_vm6, %v1609_v43, 0.0 }
 0x218   :  { %v1922_v63 = vadd.f32 %v1921_v23, %v1920_v10  ;;  %v1162_v7 = vpop.permute.xlu1 %1161  ;;  %v1850_v52 = vadd.f32 %v1849_v34, %v1848_v62  ;;  %v3602_v9 = vpop.permute.xlu0 %505  ;;  %v2173_v62 = vsel %vm705_vm2, 1.0, %v4095_v51  ;;  %v4167_v23 = vld [vmem:[#allocation46_spill] sm:$0xff] }
 0x219   :  { %v1563_v32 = vmul.f32 %v2111_v60, %v1162_v7  ;;  %vm706_vm11 = vcmp.eq.s32.totalorder %v3602_v9, %v2865_v27  ;;  %vm675_vm2 = vcmp.eq.s32.totalorder %v4167_v23, %v2865_v27 }
 0x21a   :  { %1508 = vbcast.lane.b32.xlu1 %v2684_v29, 352  ;;  %1378 = vbcast.lane.b32.xlu0 %v2644_v31, 360  ;;  %v2174_v7 = vsel %vm706_vm11, 1.0, %v4095_v51  ;;  %v2143_v21 = vsel %vm675_vm2, 1.0, %v4095_v51  ;;  %vm2325_vm11 = vmmov 0  }
 0x21b   :  { %v1742_v12 = vsel %vm1650_vm6, %v1563_v32, 0.0  ;;  %2206 = vmatprep.mubr.msk.f32.mxu0 %vm2325_vm11, %v4095_v51 }
 0x21c   :  { %v1743_v10 = vadd.f32 %v1742_v12, %v1741_v37  ;;  %v1422_v19 = vpop.permute.xlu1 %1421  ;;  %v1292_v4 = vpop.permute.xlu0 %1291 }
 0x21d   :  { %v1625_v17 = vmul.f32 %v2173_v62, %v1422_v19  ;;  %v1594_v49 = vmul.f32 %v2142_v36, %v1292_v4 }
 0x21e   :  { %1185 = vbcast.lane.b32.xlu1 %v2587_v14, 376  ;;  %529 = vbcast.lane.b32.xlu0 %v2411_v15, 368 }
 0x21f   :  { %v1886_v22 = vsel %vm1650_vm6, %v1625_v17, 0.0  ;;  %v1814_v46 = vsel %vm1650_vm6, %v1594_v49, 0.0  ;;  %v4170_v49 = vld [vmem:[#allocation22_spill] sm:$0xff] }
 0x220   :  { %v1887_v37 = vadd.f32 %v1886_v22, %v1885_v28  ;;  %v1032_v16 = vpop.permute.xlu1 %1031  ;;  %v1815_v2 = vadd.f32 %v1814_v46, %v1813_v50  ;;  %v3625_v44 = vpop.permute.xlu0 %572  ;;  %vm629_vm7 = vcmp.eq.s32.totalorder %v4170_v49, %v2865_v27  ;;  %v2128_v46 = vsel %vm660_vm5, 1.0, %v4095_v51 }
 0x221   :  { %v1532_v58 = vmul.f32 %v2080_v54, %v1032_v16  ;;  %vm722_vm15 = vcmp.eq.s32.totalorder %v3625_v44, %v2865_v27  ;;  %v2097_v54 = vsel %vm629_vm7, 1.0, %v4095_v51 }
 0x222   :  { %1445 = vbcast.lane.b32.xlu1 %v2661_v47, 360  ;;  %1315 = vbcast.lane.b32.xlu0 %v2615_v13, 368 }
 0x223   :  { %v1670_v14 = vsel %vm1650_vm6, %v1532_v58, 0.0 }
 0x224   :  { %v1671_v28 = vadd.f32 %v1670_v14, %v1669_v30  ;;  %v1229_v20 = vpop.permute.xlu1 %1228  ;;  %v1099_v53 = vpop.permute.xlu0 %1098 }
 0x225   :  { %v1579_v50 = vmul.f32 %v2127_v41, %v1229_v20  ;;  %v1548_v26 = vmul.f32 %v2096_v40, %v1099_v53  ;;  %v60_v41 = vld [vmem:[#allocation8 + $0x8] sm:$0xff] }
 0x226   :  { %1252 = vbcast.lane.b32.xlu1 %v2604_v3, 376  ;;  %596 = vbcast.lane.b32.xlu0 %v4126_v33, 368 }
 0x227   :  { %v1779_v39 = vsel %vm1650_vm6, %v1579_v50, 0.0  ;;  %v1707_v30 = vsel %vm1650_vm6, %v1548_v26, 0.0 }
 0x228   :  { %v3641_v55 = vadd.f32 %v1779_v39, %v1778_v38  ;;  %v1489_v0 = vpop.permute.xlu1 %1488  ;;  %v3650_v56 = vadd.f32 %v1707_v30, %v1706_v57  ;;  %v1359_v59 = vpop.permute.xlu0 %1358 }
 0x229   :  { %v1641_v3 = vmul.f32 %v2189_v5, %v1489_v0  ;;  %v1610_v48 = vmul.f32 %v2158_v42, %v1359_v59  ;;  %v2113_v5 = vsel %vm645_vm10, 1.0, %v4095_v51  ;;  %v4173_v59 = vld [vmem:[#allocation49_spill] sm:$0xff] }
 0x22a   :  { %1512 = vbcast.lane.b32.xlu1 %v2684_v29, 360  ;;  %1382 = vbcast.lane.b32.xlu0 %v2644_v31, 368  ;;  %vm676_vm12 = vcmp.eq.s32.totalorder %v4173_v59, %v2865_v27 }
 0x22b   :  { %v1923_v38 = vsel %vm1650_vm6, %v1641_v3, 0.0  ;;  %v1851_v6 = vsel %vm1650_vm6, %v1610_v48, 0.0 }
 0x22c   :  { %v3656_v45 = vadd.f32 %v1923_v38, %v1922_v63  ;;  %v1166_v35 = vpop.permute.xlu1 %1165  ;;  %v3660_v57 = vadd.f32 %v1851_v6, %v1850_v52  ;;  %v3662_v43 = vpop.permute.xlu0 %509  ;;  %v4168_v52 = vld [vmem:[#allocation15_spill] sm:$0xff] }
 0x22d   :  { %v1564_v11 = vmul.f32 %v2112_v25, %v1166_v35  ;;  %vm707_vm3 = vcmp.eq.s32.totalorder %v3662_v43, %v2865_v27  ;;  %vm613_vm4 = vcmp.eq.s32.totalorder %v4168_v52, %v2865_v27  ;;  %v4174_v35 = vld [vmem:[#allocation18_spill] sm:$0xff] }
 0x22e   :  { %1319 = vbcast.lane.b32.xlu1 %v2615_v13, 376  ;;  %533 = vbcast.lane.b32.xlu0 %v2411_v15, 376  ;;  %v2081_v9 = vsel %vm613_vm4, 1.0, %v4095_v51  ;;  %v2175_v6 = vsel %vm707_vm3, 1.0, %v4095_v51  ;;  %vm614_vm14 = vcmp.eq.s32.totalorder %v4174_v35, %v2865_v27 }
 0x22f   :  { %v1744_v63 = vsel %vm1650_vm6, %v1564_v11, 0.0  ;;  %v2082_v52 = vsel %vm614_vm14, 1.0, %v4095_v51 }
 0x230   :  { %v3671_v34 = vadd.f32 %v1744_v63, %v1743_v10  ;;  %v1426_v60 = vpop.permute.xlu1 %1425  ;;  %v1296_v12 = vpop.permute.xlu0 %1295 }
 0x231   :  { %v1626_v32 = vmul.f32 %v2174_v7, %v1426_v60  ;;  %v1595_v13 = vmul.f32 %v2143_v21, %v1296_v12 }
 0x232   :  { %600 = vbcast.lane.b32.xlu1 %v4126_v33, 376  ;;  %1449 = vbcast.lane.b32.xlu0 %v2661_v47, 368 }
 0x233   :  { %v1888_v15 = vsel %vm1650_vm6, %v1626_v32, 0.0  ;;  %v1816_v19 = vsel %vm1650_vm6, %v1595_v13, 0.0  ;;  %v4175_v32 = vld [vmem:[#allocation39_spill] sm:$0xff]  ;;  %v4176_v13 = vld [vmem:[#allocation25_spill] sm:$0xff] }
 0x234   :  { %v1889_v10 = vadd.f32 %v1888_v15, %v1887_v37  ;;  %v1036_v62 = vpop.permute.xlu1 %1035  ;;  %v1817_v17 = vadd.f32 %v1816_v19, %v1815_v2  ;;  %v3687_v4 = vpop.permute.xlu0 %576  ;;  %v4171_v2 = vld [vmem:[#allocation56_spill] sm:$0xff]  ;;  %vm630_vm0 = vcmp.eq.s32.totalorder %v4176_v13, %v2865_v27 }
 0x235   :  { %v1533_v36 = vmul.f32 %v2081_v9, %v1036_v62  ;;  %vm723_vm8 = vcmp.eq.s32.totalorder %v3687_v4, %v2865_v27  ;;  %vm691_vm9 = vcmp.eq.s32.totalorder %v4171_v2, %v2865_v27  ;;  %v2098_v24 = vsel %vm630_vm0, 1.0, %v4095_v51 }
 0x236   :  { %1516 = vbcast.lane.b32.xlu1 %v2684_v29, 368  ;;  %1386 = vbcast.lane.b32.xlu0 %v2644_v31, 376  ;;  %v2190_v31 = vsel %vm722_vm15, 1.0, %v4095_v51  ;;  %v2159_v26 = vsel %vm691_vm9, 1.0, %v4095_v51  ;;  %vm661_vm15 = vcmp.eq.s32.totalorder %v4175_v32, %v2865_v27 }
 0x237   :  { %v1672_v33 = vsel %vm1650_vm6, %v1533_v36, 0.0  ;;  %v2129_v19 = vsel %vm661_vm15, 1.0, %v4095_v51 }
 0x238   :  { %v1673_v22 = vadd.f32 %v1672_v33, %v1671_v28  ;;  %v1233_v37 = vpop.permute.xlu1 %1232  ;;  %v1103_v1 = vpop.permute.xlu0 %1102  ;;  %v59_v28 = vld [vmem:[#allocation8] sm:$0xff] }
 0x239   :  { %v1580_v16 = vmul.f32 %v2128_v46, %v1233_v37  ;;  %v1549_v58 = vmul.f32 %v2097_v54, %v1103_v1  ;;  %v4178_v54 = vld [vmem:[#allocation34_spill] sm:$0xff] }
 0x23a   :  { %1520 = vbcast.lane.b32.xlu1 %v2684_v29, 376  ;;  %1453 = vbcast.lane.b32.xlu0 %v2661_v47, 376  ;;  %v2210_v29 = vpack.c.bf16 %v60_v41, %v59_v28  ;;  %v2324_v47 = vmov 0.0|0.0   ;;  %vm646_vm3 = vcmp.eq.s32.totalorder %v4178_v54, %v2865_v27 }
 0x23b   :  { %v1781_v14 = vsel %vm1650_vm6, %v1580_v16, 0.0  ;;  %v1709_v50 = vsel %vm1650_vm6, %v1549_v58, 0.0  ;;  %2209 = vmatprep.subr.bf16.mxu0 %v2324_v47 }
 0x23c   :  { %v1782_v20 = vadd.f32 %v1781_v14, %v3641_v55  ;;  %v1493_v40 = vpop.permute.xlu1 %1492  ;;  %v1710_v53 = vadd.f32 %v1709_v50, %v3650_v56  ;;  %v1363_v39 = vpop.permute.xlu0 %1362  ;;  %2211 = vmatpush3.bf16.msra.mxu0 %v2210_v29  ;;  %v2114_v50 = vsel %vm646_vm3, 1.0, %v4095_v51 }
 0x23d   :  { %v1642_v8 = vmul.f32 %v2190_v31, %v1493_v40  ;;  %v1611_v30 = vmul.f32 %v2159_v26, %v1363_v39 }
 0x23f   :  { %v1925_v44 = vsel %vm1650_vm6, %v1642_v8, 0.0  ;;  %v1853_v0 = vsel %vm1650_vm6, %v1611_v30, 0.0  ;;  %v4179_v8 = vld [vmem:[#allocation48_spill] sm:$0xff]  ;;  %v4180_v30 = vld [vmem:[#allocation17_spill] sm:$0xff] }
 0x240   :  { %v1926_v55 = vadd.f32 %v1925_v44, %v3656_v45  ;;  %v1170_v18 = vpop.permute.xlu1 %1169  ;;  %v1854_v56 = vadd.f32 %v1853_v0, %v3660_v57  ;;  %v514_v42 = vpop.permute.xlu0 %513  ;;  %v2144_v57 = vsel %vm676_vm12, 1.0, %v4095_v51  ;;  %vm677_vm4 = vcmp.eq.s32.totalorder %v4179_v8, %v2865_v27 }
 0x241   :  { %v1565_v3 = vmul.f32 %v2113_v5, %v1170_v18  ;;  %vm708_vm13 = vcmp.eq.s32.totalorder %v514_v42, %v2865_v27  ;;  %vm615_vm7 = vcmp.eq.s32.totalorder %v4180_v30, %v2865_v27  ;;  %v2223_v18 = vld [vmem:[#allocation6] sm:$0xff]  ;;  %v4181_v42 = vld [vmem:[#allocation42_spill] sm:$0xff] }
 0x242   :  { %v2176_v47 = vsel %vm708_vm13, 1.0, %v4095_v51 }
 0x243   :  { %v1746_v48 = vsel %vm1650_vm6, %v1565_v3, 0.0 }
 0x244   :  { %v1747_v38 = vadd.f32 %v1746_v48, %v3671_v34  ;;  %v1430_v45 = vpop.permute.xlu1 %1429  ;;  %v1300_v11 = vpop.permute.xlu0 %1299  ;;  %v2083_v48 = vsel %vm615_vm7, 1.0, %v4095_v51 }
 0x245   :  { %v1627_v25 = vmul.f32 %v2175_v6, %v1430_v45  ;;  %v1596_v23 = vmul.f32 %v2144_v57, %v1300_v11 }
 0x247   :  { %v1890_v63 = vsel %vm1650_vm6, %v1627_v25, 0.0  ;;  %v1818_v7 = vsel %vm1650_vm6, %v1596_v23, 0.0  ;;  %v4182_v25 = vld [vmem:[#allocation24_spill] sm:$0xff] }
 0x248   :  { %v1891_v60 = vadd.f32 %v1890_v63, %v1889_v10  ;;  %v1040_v34 = vpop.permute.xlu1 %1039  ;;  %v1819_v43 = vadd.f32 %v1818_v7, %v1817_v17  ;;  %v3739_v12 = vpop.permute.xlu0 %580  ;;  %v4177_v17 = vld [vmem:[#allocation59_spill] sm:$0xff]  ;;  %vm631_vm9 = vcmp.eq.s32.totalorder %v4182_v25, %v2865_v27 }
 0x249   :  { %v1534_v21 = vmul.f32 %v2082_v52, %v1040_v34  ;;  %vm724_vm1 = vcmp.eq.s32.totalorder %v3739_v12, %v2865_v27  ;;  %vm692_vm2 = vcmp.eq.s32.totalorder %v4177_v17, %v2865_v27  ;;  %v2099_v7 = vsel %vm631_vm9, 1.0, %v4095_v51  ;;  %v4183_v52 = vld [vmem:[#allocation58_spill] sm:$0xff] }
 0x24a   :  { %v2160_v58 = vsel %vm692_vm2, 1.0, %v4095_v51  ;;  %vm693_vm11 = vcmp.eq.s32.totalorder %v4183_v52, %v2865_v27 }
 0x24b   :  { %v1674_v15 = vsel %vm1650_vm6, %v1534_v21, 0.0 }
 0x24c   :  { %v1675_v10 = vadd.f32 %v1674_v15, %v1673_v22  ;;  %v1237_v9 = vpop.permute.xlu1 %1236  ;;  %v1107_v36 = vpop.permute.xlu0 %1106  ;;  %v2191_v22 = vsel %vm723_vm8, 1.0, %v4095_v51  ;;  %vm662_vm8 = vcmp.eq.s32.totalorder %v4181_v42, %v2865_v27 }
 0x24d   :  { %v1581_v62 = vmul.f32 %v2129_v19, %v1237_v9  ;;  %v1550_v49 = vmul.f32 %v2098_v24, %v1107_v36  ;;  %v2130_v63 = vsel %vm662_vm8, 1.0, %v4095_v51  ;;  %v4184_v19 = vld [vmem:[#allocation33_spill] sm:$0xff]  ;;  %v2161_v24 = vsel %vm693_vm11, 1.0, %v4095_v51 }
 0x24e   :  { %vm647_vm12 = vcmp.eq.s32.totalorder %v4184_v19, %v2865_v27  ;;  %v4191_v19 = vld [vmem:[#allocation50_spill] sm:$0xff] }
 0x24f   :  { %v1783_v33 = vsel %vm1650_vm6, %v1581_v62, 0.0  ;;  %v1711_v46 = vsel %vm1650_vm6, %v1550_v49, 0.0 }
 0x250   :  { %v1784_v37 = vadd.f32 %v1783_v33, %v1782_v20  ;;  %v1497_v16 = vpop.permute.xlu1 %1496  ;;  %v1712_v1 = vadd.f32 %v1711_v46, %v1710_v53  ;;  %v1367_v61 = vpop.permute.xlu0 %1366  ;;  %v2115_v46 = vsel %vm647_vm12, 1.0, %v4095_v51 }
 0x251   :  { %v1643_v2 = vmul.f32 %v2191_v22, %v1497_v16  ;;  %v1612_v14 = vmul.f32 %v2160_v58, %v1367_v61 }
 0x253   :  { %v1927_v31 = vsel %vm1650_vm6, %v1643_v2, 0.0  ;;  %v1855_v41 = vsel %vm1650_vm6, %v1612_v14, 0.0  ;;  %v4185_v2 = vld [vmem:[#allocation51_spill] sm:$0xff] }
 0x254   :  { %v1928_v28 = vadd.f32 %v1927_v31, %v1926_v55  ;;  %v1174_v20 = vpop.permute.xlu1 %1173  ;;  %v1856_v40 = vadd.f32 %v1855_v41, %v1854_v56  ;;  %v518_v29 = vpop.permute.xlu0 %517  ;;  %v2145_v55 = vsel %vm677_vm4, 1.0, %v4095_v51  ;;  %vm678_vm13 = vcmp.eq.s32.totalorder %v4185_v2, %v2865_v27  ;;  %v4186_v31 = vld [vmem:[#allocation20_spill] sm:$0xff] }
 0x255   :  { %v1566_v4 = vmul.f32 %v2114_v50, %v1174_v20  ;;  %vm709_vm5 = vcmp.eq.s32.totalorder %v518_v29, %v2865_v27  ;;  %vm616_vm14 = vcmp.eq.s32.totalorder %v4186_v31, %v2865_v27  ;;  %v2146_v41 = vsel %vm678_vm13, 1.0, %v4095_v51  ;;  %v4194_v31 = vld [vmem:[#allocation26_spill] sm:$0xff] }
 0x256   :  { %v2177_v14 = vsel %vm709_vm5, 1.0, %v4095_v51  ;;  %vm679_vm4 = vcmp.eq.s32.totalorder %v4191_v19, %v2865_v27  ;;  %vm633_vm8 = vcmp.eq.s32.totalorder %v4194_v31, %v2865_v27 }
 0x257   :  { %v1748_v53 = vsel %vm1650_vm6, %v1566_v4, 0.0 }
 0x258   :  { %v1749_v26 = vadd.f32 %v1748_v53, %v1747_v38  ;;  %v1434_v39 = vpop.permute.xlu1 %1433  ;;  %v1304_v0 = vpop.permute.xlu0 %1303 }
 0x259   :  { %v1628_v44 = vmul.f32 %v2176_v47, %v1434_v39  ;;  %v1597_v5 = vmul.f32 %v2145_v55, %v1304_v0  ;;  %2047 = vadd.xlane.f32.xlu0 %v2223_v18  ;;  %v4187_v39 = vld [vmem:[#allocation41_spill] sm:$0xff] }
 0x25a   :  { %vm663_vm15 = vcmp.eq.s32.totalorder %v4187_v39, %v2865_v27 }
 0x25b   :  { %v1892_v56 = vsel %vm1650_vm6, %v1628_v44, 0.0  ;;  %v1820_v59 = vsel %vm1650_vm6, %v1597_v5, 0.0  ;;  %v4188_v44 = vld [vmem:[#allocation27_spill] sm:$0xff]  ;;  %v2131_v5 = vsel %vm663_vm15, 1.0, %v4095_v51  ;;  %vm1956_vm15 = vcmask 1041409  }
 0x25c   :  { %v1893_v3 = vadd.f32 %v1892_v56, %v1891_v60  ;;  %v1044_v38 = vpop.permute.xlu1 %1043  ;;  %v1821_v45 = vadd.f32 %v1820_v59, %v1819_v43  ;;  %v3777_v35 = vpop.permute.xlu0 %584  ;;  %vm632_vm0 = vcmp.eq.s32.totalorder %v4188_v44, %v2865_v27 }
 0x25d   :  { %v1535_v6 = vmul.f32 %v2083_v48, %v1044_v38  ;;  %vm725_vm10 = vcmp.eq.s32.totalorder %v3777_v35, %v2865_v27  ;;  %v4189_v48 = vld [vmem:[#allocation61_spill] sm:$0xff] }
 0x25f   :  { %v1676_v57 = vsel %vm1650_vm6, %v1535_v6, 0.0 }
 0x260   :  { %v1677_v11 = vadd.f32 %v1676_v57, %v1675_v10  ;;  %v1241_v23 = vpop.permute.xlu1 %1240  ;;  %v1111_v34 = vpop.permute.xlu0 %1110  ;;  %v2192_v10 = vsel %vm724_vm1, 1.0, %v4095_v51  ;;  %vm694_vm1 = vcmp.eq.s32.totalorder %v4189_v48, %v2865_v27  ;;  %v2193_v57 = vsel %vm725_vm10, 1.0, %v4095_v51 }
 0x261   :  { %v1582_v60 = vmul.f32 %v2130_v63, %v1241_v23  ;;  %v1551_v32 = vmul.f32 %v2099_v7, %v1111_v34 }
 0x263   :  { %v1785_v43 = vsel %vm1650_vm6, %v1582_v60, 0.0  ;;  %v1713_v13 = vsel %vm1650_vm6, %v1551_v32, 0.0  ;;  %v2162_v60 = vsel %vm694_vm1, 1.0, %v4095_v51 }
 0x264   :  { %v1786_v21 = vadd.f32 %v1785_v43, %v1784_v37  ;;  %v1501_v15 = vpop.permute.xlu1 %1500  ;;  %v1714_v9 = vadd.f32 %v1713_v13, %v1712_v1  ;;  %v1371_v36 = vpop.permute.xlu0 %1370 }
 0x265   :  { %v1644_v62 = vmul.f32 %v2192_v10, %v1501_v15  ;;  %v1613_v17 = vmul.f32 %v2161_v24, %v1371_v36 }
 0x267   :  { %v1929_v49 = vsel %vm1650_vm6, %v1644_v62, 0.0  ;;  %v1857_v37 = vsel %vm1650_vm6, %v1613_v17, 0.0  ;;  %v4192_v17 = vld [vmem:[#allocation19_spill] sm:$0xff] }
 0x268   :  { %v1930_v33 = vadd.f32 %v1929_v49, %v1928_v28  ;;  %v1178_v16 = vpop.permute.xlu1 %1177  ;;  %v1858_v22 = vadd.f32 %v1857_v37, %v1856_v40  ;;  %v522_v54 = vpop.permute.xlu0 %521  ;;  %vm617_vm5 = vcmp.eq.s32.totalorder %v4192_v17, %v2865_v27 }
 0x269   :  { %v1567_v12 = vmul.f32 %v2115_v46, %v1178_v16  ;;  %vm710_vm3 = vcmp.eq.s32.totalorder %v522_v54, %v2865_v27  ;;  %v2085_v54 = vsel %vm617_vm5, 1.0, %v4095_v51 }
 0x26a   :  { %v2178_v36 = vsel %vm710_vm3, 1.0, %v4095_v51  ;;  %vm1958_vm3 = vcmask 1042434  }
 0x26b   :  { %v1750_v1 = vsel %vm1650_vm6, %v1567_v12, 0.0 }
 0x26c   :  { %v1751_v58 = vadd.f32 %v1750_v1, %v1749_v26  ;;  %v1438_v61 = vpop.permute.xlu1 %1437  ;;  %v1308_v20 = vpop.permute.xlu0 %1307  ;;  %v2084_v26 = vsel %vm616_vm14, 1.0, %v4095_v51  ;;  %v4193_v1 = vld [vmem:[#allocation44_spill] sm:$0xff] }
 0x26d   :  { %v1629_v28 = vmul.f32 %v2177_v14, %v1438_v61  ;;  %v1598_v50 = vmul.f32 %v2146_v41, %v1308_v20  ;;  %vm664_vm7 = vcmp.eq.s32.totalorder %v4193_v1, %v2865_v27 }
 0x26f   :  { %v1894_v40 = vsel %vm1650_vm6, %v1629_v28, 0.0  ;;  %v1822_v8 = vsel %vm1650_vm6, %v1598_v50, 0.0  ;;  %v2132_v50 = vsel %vm664_vm7, 1.0, %v4095_v51 }
 0x270   :  { %v1895_v4 = vadd.f32 %v1894_v40, %v1893_v3  ;;  %v1048_v53 = vpop.permute.xlu1 %1047  ;;  %v1823_v29 = vadd.f32 %v1822_v8, %v1821_v45  ;;  %v3814_v30 = vpop.permute.xlu0 %588  ;;  %v2100_v3 = vsel %vm632_vm0, 1.0, %v4095_v51 }
 0x271   :  { %v1536_v47 = vmul.f32 %v2084_v26, %v1048_v53  ;;  %vm726_vm9 = vcmp.eq.s32.totalorder %v3814_v30, %v2865_v27  ;;  %v4195_v53 = vld [vmem:[#allocation60_spill] sm:$0xff]  ;;  %v4196_v30 = vld [vmem:[#allocation35_spill] sm:$0xff] }
 0x272   :  { %vm695_vm10 = vcmp.eq.s32.totalorder %v4195_v53, %v2865_v27  ;;  %vm649_vm11 = vcmp.eq.s32.totalorder %v4196_v30, %v2865_v27 }
 0x273   :  { %v1678_v55 = vsel %vm1650_vm6, %v1536_v47, 0.0 }
 0x274   :  { %v1679_v0 = vadd.f32 %v1678_v55, %v1677_v11  ;;  %v1245_v18 = vpop.permute.xlu1 %1244  ;;  %v1115_v59 = vpop.permute.xlu0 %1114  ;;  %v4190_v11 = vld [vmem:[#allocation36_spill] sm:$0xff] }
 0x275   :  { %v1583_v56 = vmul.f32 %v2131_v5, %v1245_v18  ;;  %v1552_v38 = vmul.f32 %v2100_v3, %v1115_v59  ;;  %vm648_vm2 = vcmp.eq.s32.totalorder %v4190_v11, %v2865_v27  ;;  %v2194_v5 = vsel %vm726_vm9, 1.0, %v4095_v51 }
 0x276   :  { %v2116_v13 = vsel %vm648_vm2, 1.0, %v4095_v51  ;;  %v2163_v3 = vsel %vm695_vm10, 1.0, %v4095_v51 }
 0x277   :  { %v1787_v42 = vsel %vm1650_vm6, %v1583_v56, 0.0  ;;  %v1715_v6 = vsel %vm1650_vm6, %v1552_v38, 0.0 }
 0x278   :  { %v1788_v45 = vadd.f32 %v1787_v42, %v1786_v21  ;;  %v1505_v25 = vpop.permute.xlu1 %1504  ;;  %v1716_v23 = vadd.f32 %v1715_v6, %v1714_v9  ;;  %v1375_v7 = vpop.permute.xlu0 %1374 }
 0x279   :  { %v1645_v63 = vmul.f32 %v2193_v57, %v1505_v25  ;;  %v1614_v34 = vmul.f32 %v2162_v60, %v1375_v7  ;;  %v2117_v57 = vsel %vm649_vm11, 1.0, %v4095_v51  ;;  %vm1962_vm11 = vcmask 1044484  }
 0x27b   :  { %v1931_v52 = vsel %vm1650_vm6, %v1645_v63, 0.0  ;;  %v1859_v43 = vsel %vm1650_vm6, %v1614_v34, 0.0 }
 0x27c   :  { %v1932_v32 = vadd.f32 %v1931_v52, %v1930_v33  ;;  %v1182_v21 = vpop.permute.xlu1 %1181  ;;  %v1860_v35 = vadd.f32 %v1859_v43, %v1858_v22  ;;  %v3836_v10 = vpop.permute.xlu0 %525  ;;  %v2147_v33 = vsel %vm679_vm4, 1.0, %v4095_v51  ;;  %v4197_v52 = vld [vmem:[#allocation53_spill] sm:$0xff] }
 0x27d   :  { %v1568_v15 = vmul.f32 %v2116_v13, %v1182_v21  ;;  %vm711_vm12 = vcmp.eq.s32.totalorder %v3836_v10, %v2865_v27  ;;  %vm680_vm13 = vcmp.eq.s32.totalorder %v4197_v52, %v2865_v27  ;;  %v4198_v13 = vld [vmem:[#allocation43_spill] sm:$0xff] }
 0x27e   :  { %vm665_vm14 = vcmp.eq.s32.totalorder %v4198_v13, %v2865_v27  ;;  %v2179_v19 = vsel %vm711_vm12, 1.0, %v4095_v51  ;;  %vm1964_vm12 = vcmask 1045509  }
 0x27f   :  { %v1752_v9 = vsel %vm1650_vm6, %v1568_v15, 0.0 }
 0x280   :  { %v1753_v62 = vadd.f32 %v1752_v9, %v1751_v58  ;;  %v1442_v24 = vpop.permute.xlu1 %1441  ;;  %v1312_v37 = vpop.permute.xlu0 %1311 }
 0x281   :  { %v1630_v49 = vmul.f32 %v2178_v36, %v1442_v24  ;;  %v1599_v46 = vmul.f32 %v2147_v33, %v1312_v37  ;;  %v2148_v36 = vsel %vm680_vm13, 1.0, %v4095_v51  ;;  %vm1966_vm13 = vcmask 1046534  }
 0x283   :  { %v1896_v16 = vsel %vm1650_vm6, %v1630_v49, 0.0  ;;  %v1824_v12 = vsel %vm1650_vm6, %v1599_v46, 0.0 }
 0x284   :  { %v3846_v22 = vadd.f32 %v1896_v16, %v1895_v4  ;;  %v1052_v2 = vpop.permute.xlu1 %1051  ;;  %v3852_v58 = vadd.f32 %v1824_v12, %v1823_v29  ;;  %v3854_v14 = vpop.permute.xlu0 %592  ;;  %v2101_v4 = vsel %vm633_vm8, 1.0, %v4095_v51  ;;  %vm1960_vm8 = vcmask 1043459  }
 0x285   :  { %v1537_v61 = vmul.f32 %v2085_v54, %v1052_v2  ;;  %vm727_vm0 = vcmp.eq.s32.totalorder %v3854_v14, %v2865_v27 }
 0x287   :  { %v1680_v28 = vsel %vm1650_vm6, %v1537_v61, 0.0 }
 0x288   :  { %v1681_v41 = vadd.f32 %v1680_v28, %v1679_v0  ;;  %v1249_v20 = vpop.permute.xlu1 %1248  ;;  %v1119_v8 = vpop.permute.xlu0 %1118 }
 0x289   :  { %v1584_v40 = vmul.f32 %v2132_v50, %v1249_v20  ;;  %v1553_v39 = vmul.f32 %v2101_v4, %v1119_v8  ;;  %v4200_v4 = vld [vmem:[#allocation52_spill] sm:$0xff] }
 0x28a   :  { %v1682_v26 = vrot.slane %v1681_v41, 4  ;;  %vm681_vm2 = vcmp.eq.s32.totalorder %v4200_v4, %v2865_v27 }
 0x28b   :  { %v1789_v29 = vsel %vm1650_vm6, %v1584_v40, 0.0  ;;  %v1717_v55 = vsel %vm1650_vm6, %v1553_v39, 0.0  ;;  %v2149_v30 = vsel %vm681_vm2, 1.0, %v4095_v51 }
 0x28c   :  { %v1683_v47 = vadd.f32 %v1682_v26, %v1681_v41  ;;  %v1790_v44 = vadd.f32 %v1789_v29, %v1788_v45  ;;  %v1509_v0 = vpop.permute.xlu1 %1508  ;;  %v1718_v18 = vadd.f32 %v1717_v55, %v1716_v23  ;;  %v1379_v59 = vpop.permute.xlu0 %1378  ;;  %v4199_v41 = vld [vmem:[#allocation63_spill] sm:$0xff] }
 0x28d   :  { %v1646_v56 = vmul.f32 %v2194_v5, %v1509_v0  ;;  %v1615_v38 = vmul.f32 %v2163_v3, %v1379_v59  ;;  %vm696_vm1 = vcmp.eq.s32.totalorder %v4199_v41, %v2865_v27 }
 0x28e   :  { %v1684_v48 = vrot.slane %v1683_v47, 2  ;;  %v1719_v42 = vrot.slane %v1718_v18, 4  ;;  %v2164_v39 = vsel %vm696_vm1, 1.0, %v4095_v51 }
 0x28f   :  { %v1933_v6 = vsel %vm1650_vm6, %v1646_v56, 0.0  ;;  %v1861_v25 = vsel %vm1650_vm6, %v1615_v38, 0.0 }
 0x290   :  { %v1934_v45 = vadd.f32 %v1933_v6, %v1932_v32  ;;  %v1186_v11 = vpop.permute.xlu1 %1185  ;;  %v1685_v63 = vadd.f32 %v1684_v48, %v1683_v47  ;;  %v1720_v23 = vadd.f32 %v1719_v42, %v1718_v18  ;;  %v1862_v60 = vadd.f32 %v1861_v25, %v1860_v35  ;;  %v3876_v34 = vpop.permute.xlu0 %529 }
 0x291   :  { %v1569_v7 = vmul.f32 %v2117_v57, %v1186_v11  ;;  %vm712_vm4 = vcmp.eq.s32.totalorder %v3876_v34, %v2865_v27 }
 0x292   :  { %v1721_v43 = vrot.slane %v1720_v23, 2  ;;  %v1686_v35 = vrot.slane %v1685_v63, 1 }
 0x293   :  { %v1754_v21 = vsel %vm1650_vm6, %v1569_v7, 0.0  ;;  %v4201_v7 = vld [vmem:[#allocation62_spill] sm:$0xff] }
 0x294   :  { %v1755_v32 = vadd.f32 %v1754_v21, %v1753_v62  ;;  %v1446_v15 = vpop.permute.xlu1 %1445  ;;  %v1722_v9 = vadd.f32 %v1721_v43, %v1720_v23  ;;  %v1316_v17 = vpop.permute.xlu0 %1315  ;;  %v2133_v62 = vsel %vm665_vm14, 1.0, %v4095_v51  ;;  %v1687_v2 = vadd.f32 %v1686_v35, %v1685_v63 }
 0x295   :  { %v1631_v24 = vmul.f32 %v2179_v19, %v1446_v15  ;;  %v1600_v33 = vmul.f32 %v2148_v36, %v1316_v17  ;;  %vm697_vm7 = vcmp.eq.s32.totalorder %v4201_v7, %v2865_v27  ;;  %vm1968_vm14 = vcmask 1047559  }
 0x296   :  { %v1756_v49 = vrot.slane %v1755_v32, 4  ;;  %v1723_v37 = vrot.slane %v1722_v9, 1 }
 0x297   :  { %v1898_v46 = vsel %vm1650_vm6, %v1631_v24, 0.0  ;;  %v1826_v12 = vsel %vm1650_vm6, %v1600_v33, 0.0 }
 0x298   :  { %v1757_v16 = vadd.f32 %v1756_v49, %v1755_v32  ;;  %v1899_v10 = vadd.f32 %v1898_v46, %v3846_v22  ;;  %v1253_v54 = vpop.permute.xlu1 %1252  ;;  %v1724_v1 = vadd.f32 %v1723_v37, %v1722_v9  ;;  %v1827_v61 = vadd.f32 %v1826_v12, %v3852_v58  ;;  %v597_v28 = vpop.permute.xlu0 %596 }
 0x299   :  { %v1585_v31 = vmul.f32 %v2133_v62, %v1253_v54  ;;  %v2195_v58 = vsel %vm727_vm0, 1.0, %v4095_v51  ;;  %vm728_vm5 = vcmp.eq.s32.totalorder %v597_v28, %v2865_v27  ;;  %v2165_v9 = vsel %vm697_vm7, 1.0, %v4095_v51 }
 0x29a   :  { %v1758_v20 = vrot.slane %v1757_v16, 2  ;;  %v1957_v50 = vsel %vm1956_vm15, %v1724_v1, %v1687_v2  ;;  %v2196_v15 = vsel %vm728_vm5, 1.0, %v4095_v51 }
 0x29b   :  { %v1791_v40 = vsel %vm1650_vm6, %v1585_v31, 0.0 }
 0x29c   :  { %v1759_v22 = vadd.f32 %v1758_v20, %v1757_v16  ;;  %v1792_v8 = vadd.f32 %v1791_v40, %v1790_v44  ;;  %v1513_v53 = vpop.permute.xlu1 %1512  ;;  %v1383_v29 = vpop.permute.xlu0 %1382 }
 0x29d   :  { %v1647_v26 = vmul.f32 %v2195_v58, %v1513_v53  ;;  %v1616_v0 = vmul.f32 %v2164_v39, %v1383_v29 }
 0x29e   :  { %v1760_v47 = vrot.slane %v1759_v22, 1  ;;  %v1793_v55 = vrot.slane %v1792_v8, 4 }
 0x29f   :  { %v1935_v5 = vsel %vm1650_vm6, %v1647_v26, 0.0  ;;  %v1863_v3 = vsel %vm1650_vm6, %v1616_v0, 0.0 }
 0x2a0   :  { %v1761_v18 = vadd.f32 %v1760_v47, %v1759_v22  ;;  %v1794_v44 = vadd.f32 %v1793_v55, %v1792_v8  ;;  %v1936_v56 = vadd.f32 %v1935_v5, %v1934_v45  ;;  %v1320_v59 = vpop.permute.xlu1 %1319  ;;  %v1864_v14 = vadd.f32 %v1863_v3, %v1862_v60  ;;  %v534_v38 = vpop.permute.xlu0 %533 }
 0x2a1   :  { %v1601_v48 = vmul.f32 %v2149_v30, %v1320_v59  ;;  %v2180_v45 = vsel %vm712_vm4, 1.0, %v4095_v51  ;;  %vm713_vm10 = vcmp.eq.s32.totalorder %v534_v38, %v2865_v27 }
 0x2a2   :  { %v1959_v42 = vsel %vm1958_vm3, %v1761_v18, %v1957_v50  ;;  %v1795_v6 = vrot.slane %v1794_v44, 2  ;;  %v2181_v2 = vsel %vm713_vm10, 1.0, %v4095_v51 }
 0x2a3   :  { %v1828_v25 = vsel %vm1650_vm6, %v1601_v48, 0.0 }
 0x2a4   :  { %v1796_v57 = vadd.f32 %v1795_v6, %v1794_v44  ;;  %v1829_v11 = vadd.f32 %v1828_v25, %v1827_v61  ;;  %v601_v63 = vpop.permute.xlu1 %600  ;;  %v1450_v23 = vpop.permute.xlu0 %1449 }
 0x2a5   :  { %v1632_v43 = vmul.f32 %v2180_v45, %v1450_v23  ;;  %vm729_vm9 = vcmp.eq.s32.totalorder %v601_v63, %v2865_v27 }
 0x2a6   :  { %v1797_v60 = vrot.slane %v1796_v57, 1  ;;  %v1830_v52 = vrot.slane %v1829_v11, 4  ;;  %v2197_v16 = vsel %vm729_vm9, 1.0, %v4095_v51 }
 0x2a7   :  { %v1900_v13 = vsel %vm1650_vm6, %v1632_v43, 0.0 }
 0x2a8   :  { %v1798_v21 = vadd.f32 %v1797_v60, %v1796_v57  ;;  %v1831_v34 = vadd.f32 %v1830_v52, %v1829_v11  ;;  %v1517_v32 = vpop.permute.xlu1 %1516  ;;  %v1901_v19 = vadd.f32 %v1900_v13, %v1899_v10  ;;  %v1387_v24 = vpop.permute.xlu0 %1386 }
 0x2a9   :  { %v1648_v35 = vmul.f32 %v2196_v15, %v1517_v32  ;;  %v1617_v17 = vmul.f32 %v2165_v9, %v1387_v24 }
 0x2aa   :  { %v1832_v36 = vrot.slane %v1831_v34, 2  ;;  %v1961_v49 = vsel %vm1960_vm8, %v1798_v21, %v1959_v42 }
 0x2ab   :  { %v1937_v33 = vsel %vm1650_vm6, %v1648_v35, 0.0  ;;  %v1865_v62 = vsel %vm1650_vm6, %v1617_v17, 0.0 }
 0x2ac   :  { %v1833_v37 = vadd.f32 %v1832_v36, %v1831_v34  ;;  %v1938_v46 = vadd.f32 %v1937_v33, %v1936_v56  ;;  %v1521_v12 = vpop.permute.xlu1 %1520  ;;  %v1866_v54 = vadd.f32 %v1865_v62, %v1864_v14  ;;  %v1454_v1 = vpop.permute.xlu0 %1453 }
 0x2ad   :  { %v1649_v10 = vmul.f32 %v2197_v16, %v1521_v12  ;;  %v1633_v31 = vmul.f32 %v2181_v2, %v1454_v1 }
 0x2ae   :  { %v1834_v61 = vrot.slane %v1833_v37, 1  ;;  %v1867_v28 = vrot.slane %v1866_v54, 4 }
 0x2af   :  { %v1939_v27 = vsel %vm1650_vm6, %v1649_v10, 0.0  ;;  %v1902_v50 = vsel %vm1650_vm6, %v1633_v31, 0.0 }
 0x2b0   :  { %v1835_v41 = vadd.f32 %v1834_v61, %v1833_v37  ;;  %v1940_v20 = vadd.f32 %v1939_v27, %v1938_v46  ;;  %v1868_v40 = vadd.f32 %v1867_v28, %v1866_v54  ;;  %v1903_v4 = vadd.f32 %v1902_v50, %v1901_v19 }
 0x2b2   :  { %v1941_v22 = vrot.slane %v1940_v20, 4  ;;  %v1963_v8 = vsel %vm1962_vm11, %v1835_v41, %v1961_v49  ;;  %v1869_v53 = vrot.slane %v1868_v40, 2  ;;  %v1904_v58 = vrot.slane %v1903_v4, 4 }
 0x2b4   :  { %v1942_v26 = vadd.f32 %v1941_v22, %v1940_v20  ;;  %v1870_v39 = vadd.f32 %v1869_v53, %v1868_v40  ;;  %v1905_v51 = vadd.f32 %v1904_v58, %v1903_v4 }
 0x2b6   :  { %v1943_v29 = vrot.slane %v1942_v26, 2  ;;  %v1871_v47 = vrot.slane %v1870_v39, 1  ;;  %v1906_v55 = vrot.slane %v1905_v51, 2 }
 0x2b8   :  { %v1944_v0 = vadd.f32 %v1943_v29, %v1942_v26  ;;  %v1872_v5 = vadd.f32 %v1871_v47, %v1870_v39  ;;  %v1907_v30 = vadd.f32 %v1906_v55, %v1905_v51 }
 0x2ba   :  { %v1945_v18 = vrot.slane %v1944_v0, 1  ;;  %v1908_v44 = vrot.slane %v1907_v30, 1  ;;  %v1965_v56 = vsel %vm1964_vm12, %v1872_v5, %v1963_v8 }
 0x2bc   :  { %v1946_v3 = vadd.f32 %v1945_v18, %v1944_v0  ;;  %v1909_v59 = vadd.f32 %v1908_v44, %v1907_v30 }
 0x2be   :  { %v1967_v14 = vsel %vm1966_vm13, %v1909_v59, %v1965_v56 }
 0x2bf   :  { %v1969_v48 = vsel %vm1968_vm14, %v1946_v3, %v1967_v14 }
 0x2c0   :  { %2207 = vmatmul.mubr.msk.f32.vlgmr.msra.gmra.mrb[0].mxu0 %vm1650_vm6, %v1969_v48 }
 0x2e6   :  { %v2048_v38 = vpop.xlane.xlu0 %2047 }
 0x2e7   :  { %v2049_v42 = vmax.f32 %v2048_v38, 1.0 }
 0x2e9   :  { %2221 = vrcp.f32 %v2049_v42 }
 0x2f3   :  { %v2222_v6 = vpop.eup %2221 }
 0x393   :  { %v2038_v25 = vpop.f32.mrb[0].mxu0 }
 0x394   :  { %v2052_v57 = vmul.f32 %v2222_v6, %v2038_v25  ;;  %v2208_v11 = vpop.f32.mrb[1].mxu0 }
 0x396   :  { %2053 = vst [vmem:[#allocation9] sm:$0xff] %v2052_v57 }
 0x397   :  { %2301 = shalt.err (!%p2298_p0)
}
 0x398   :  { %s2302_s25 = scalar_lea.hbm %s3943_s3, 128 }
 0x399   :  { %p2303_p1 = scmp.ne.s32.totalorder %s3943_s3, %s2302_s25  ;;  %p2306_p2 = scmp.lt.u32.totalorder %s2302_s25, %s3943_s3 }
 0x39b   :  { %p2308_p3 = pnand %p2306_p2, %p2303_p1 }
 0x39d   :  { %2311 = shalt.err (!%p2308_p3)
}
 0x39e   :  { %2063 = dma.vmem_to_hbm [thread:$0]  %s2061_s21, 128, %s3943_s3, [#allocation5]  }
 0x39f   :  { %2316 = dma.done.wait [#allocation5], 128  }
 0x3a0   :  { %2317 = vsyncadd [#allocation5], 4294967168 }
 0x3a1   :  { %2067 = vsyncpa [#allocation4], 1 }
 0x3a2   :  { %2068 = vsyncpa [#allocation7], 1 }
 0x3a3   :  { %2069 = vsyncpa [#allocation5], 1 }

</bundles_post_ra>
